<compile_context>
chip_gen: v7x
topology: tpu7x:2x2x1
jax: 0.10.0
libtpu: 0.0.40
codegen_flags: <defaults>
</compile_context>

<pallas_src>
import jax
import jax.numpy as jnp
from jax.experimental import pallas as pl
from jax.experimental.pallas import tpu as pltpu

COORD_DIM = 496
COORD_DIM_PAD = 512          # 496 -> 512: clean 128-lane groups for the first matmul
H1 = 64
H1_PAD = 128                 # 64-wide hidden padded to a full 128-lane group
LATENT_DIM = 3               # forced by latent.view(B, 3) in the reference code
HEAD_PAD = 8                 # fused [mu | logvar | pad] head width
BN_EPS = 0.8
LRELU_SLOPE = 0.2
SUBLANE = 8                  # f32 sublane height


def _encoder_kernel(x_ref, mmask_ref, sp_ref,
                    w1_ref, w2_ref, w3_ref, w4_ref, w5_ref, wh_ref,
                    out_ref):
    """Whole Encoder forward in one kernel (tiny model -> fully VMEM resident)."""
    mmask = mmask_ref[...]                    # (Bp, 1): 1/B on valid rows, 0 on pad rows
    sp = sp_ref[...]                          # (16, 512): packed biases + BN params

    b1 = sp[0:1, 0:H1_PAD]
    b2 = sp[1:2, 0:128]
    b3 = sp[2:3, 0:256]
    b4 = sp[3:4, 0:512]
    b5 = sp[4:5, 0:HEAD_PAD]
    bh = sp[5:6, 0:HEAD_PAD]
    g2 = sp[6:7, 0:128]
    be2 = sp[7:8, 0:128]
    g3 = sp[8:9, 0:256]
    be3 = sp[9:10, 0:256]
    g4 = sp[10:11, 0:512]
    be4 = sp[11:12, 0:512]

    def lrelu(v):
        # slope < 1  =>  LeakyReLU(v) == max(v, slope * v) (no compare+select pair)
        return jnp.maximum(v, LRELU_SLOPE * v)

    def linear(v, w_ref, b):
        return jnp.dot(v, w_ref[...], preferred_element_type=jnp.float32) + b

    def batchnorm(v, gamma, beta):
        # training-mode BatchNorm1d over the *valid* batch rows only
        # (padded rows contribute 0 because mmask is 0 there).
        m = jnp.sum(v * mmask, axis=0, keepdims=True)
        var = jnp.sum(jnp.square(v - m) * mmask, axis=0, keepdims=True)
        scale = gamma * jax.lax.rsqrt(var + BN_EPS)
        shift = beta - m * scale
        return v * scale + shift

    x = x_ref[...]                                          # (Bp, 512)
    # block(496, 64, normalize=False): Linear -> LeakyReLU   (64 padded to 128 cols)
    h = lrelu(linear(x, w1_ref, b1))                        # (Bp, 128), cols 64.. == 0
    # block(64, 128): Linear -> BatchNorm1d -> LeakyReLU
    h = lrelu(batchnorm(linear(h, w2_ref, b2), g2, be2))    # (Bp, 128)
    # block(128, 256)
    h = lrelu(batchnorm(linear(h, w3_ref, b3), g3, be3))    # (Bp, 256)
    # block(256, 512)
    h = lrelu(batchnorm(linear(h, w4_ref, b4), g4, be4))    # (Bp, 512)
    # Linear(512, latent_dim) -> Tanh   (latent padded to 8 cols; pad cols stay 0)
    latent = jnp.tanh(linear(h, w5_ref, b5))                # (Bp, 8)
    # fused heads: out[:, 0:3] = mu, out[:, 3:6] = logvar
    out_ref[...] = linear(latent, wh_ref, bh)               # (Bp, 8)


def encoder_forward(x, packed):
    """x: (B, 496) float32.  Returns (mu, logvar), each (B, LATENT_DIM)."""
    sp, w1, w2, w3, w4, w5, wh = packed
    B = x.shape[0]
    Bp = max(SUBLANE, ((B + SUBLANE - 1) // SUBLANE) * SUBLANE)

    x_pad = jnp.zeros((Bp, COORD_DIM_PAD), jnp.float32)
    x_pad = x_pad.at[:B, :COORD_DIM].set(x.astype(jnp.float32))
    mmask = jnp.zeros((Bp, 1), jnp.float32).at[:B, :].set(1.0 / B)

    flops = 2 * Bp * (COORD_DIM_PAD * H1_PAD + 128 * 128 + 128 * 256 + 256 * 512
                      + 512 * HEAD_PAD + HEAD_PAD * HEAD_PAD)
    bytes_accessed = 4 * (x_pad.size + mmask.size + sp.size + w1.size + w2.size
                          + w3.size + w4.size + w5.size + wh.size + Bp * HEAD_PAD)
    cost = pl.CostEstimate(flops=flops,
                           transcendentals=Bp * HEAD_PAD,
                           bytes_accessed=bytes_accessed)

    vmem = pl.BlockSpec(memory_space=pltpu.MemorySpace.VMEM)
    out = pl.pallas_call(
        _encoder_kernel,
        out_shape=jax.ShapeDtypeStruct((Bp, HEAD_PAD), jnp.float32),
        in_specs=[vmem] * 9,
        out_specs=vmem,
        cost_estimate=cost,
    )(x_pad, mmask, sp, w1, w2, w3, w4, w5, wh)

    mu = out[:B, 0:LATENT_DIM]
    logvar = out[:B, LATENT_DIM:2 * LATENT_DIM]
    return mu, logvar


def init_params(key):
    """Raw (unpadded) parameters; Linear weights stored as (in, out)."""
    dims = [(COORD_DIM, H1), (H1, 128), (128, 256), (256, 512), (512, LATENT_DIM),
            (LATENT_DIM, LATENT_DIM), (LATENT_DIM, LATENT_DIM)]
    keys = jax.random.split(key, len(dims))
    lin = []
    for k, (fin, fout) in zip(keys, dims):
        kw, kb = jax.random.split(k)
        bound = 1.0 / (fin ** 0.5)
        w = jax.random.uniform(kw, (fin, fout), jnp.float32, -bound, bound)
        b = jax.random.uniform(kb, (1, fout), jnp.float32, -bound, bound)
        lin.append((w, b))

    def bn(n):
        # PyTorch default init: gamma = 1, beta = 0
        return jnp.ones((1, n), jnp.float32), jnp.zeros((1, n), jnp.float32)

    return {"lin": lin, "bn": [bn(128), bn(256), bn(512)]}


def pack_params(raw):
    """Pad / pack raw params into the kernel layout (7 arrays total)."""
    (w1, b1), (w2, b2), (w3, b3), (w4, b4), (w5, b5), (wmu, bmu), (wvar, bvar) = raw["lin"]
    (g2, be2), (g3, be3), (g4, be4) = raw["bn"]

    def pad2(a, rows, cols):
        return jnp.zeros((rows, cols), jnp.float32).at[:a.shape[0], :a.shape[1]].set(a)

    w1p = pad2(w1, COORD_DIM_PAD, H1_PAD)        # (512, 128) zero-padded rows + cols
    w2p = pad2(w2, H1_PAD, 128)                  # (128, 128) zero-padded rows
    w3p = w3                                     # (128, 256)
    w4p = w4                                     # (256, 512)
    w5p = pad2(w5, 512, HEAD_PAD)                # (512, 8) zero-padded cols
    # fused mu|logvar head: (8, 8)
    whp = jnp.zeros((HEAD_PAD, HEAD_PAD), jnp.float32)
    whp = whp.at[:LATENT_DIM, 0:LATENT_DIM].set(wmu)
    whp = whp.at[:LATENT_DIM, LATENT_DIM:2 * LATENT_DIM].set(wvar)

    # one packed (16, 512) array for all biases + BN params -> single DMA
    sp = jnp.zeros((16, 512), jnp.float32)
    sp = sp.at[0, :H1].set(b1[0])
    sp = sp.at[1, :128].set(b2[0])
    sp = sp.at[2, :256].set(b3[0])
    sp = sp.at[3, :512].set(b4[0])
    sp = sp.at[4, :LATENT_DIM].set(b5[0])
    sp = sp.at[5, :LATENT_DIM].set(bmu[0])
    sp = sp.at[5, LATENT_DIM:2 * LATENT_DIM].set(bvar[0])
    sp = sp.at[6, :128].set(g2[0])
    sp = sp.at[7, :128].set(be2[0])
    sp = sp.at[8, :256].set(g3[0])
    sp = sp.at[9, :256].set(be3[0])
    sp = sp.at[10, :512].set(g4[0])
    sp = sp.at[11, :512].set(be4[0])

    return (sp, w1p, w2p, w3p, w4p, w5p, whp)


def encoder_reference(x, raw):
    """Pure-JAX reference mirroring the PyTorch module (training-mode BN)."""
    (w1, b1), (w2, b2), (w3, b3), (w4, b4), (w5, b5), (wmu, bmu), (wvar, bvar) = raw["lin"]
    (g2, be2), (g3, be3), (g4, be4) = raw["bn"]
    hp = jax.lax.Precision.HIGHEST

    def lin(v, w, b):
        return jnp.dot(v, w, precision=hp) + b

    def lrelu(v):
        return jnp.where(v > 0, v, LRELU_SLOPE * v)

    def bn(v, g, be):
        m = jnp.mean(v, axis=0, keepdims=True)
        var = jnp.mean(jnp.square(v - m), axis=0, keepdims=True)
        return (v - m) * jax.lax.rsqrt(var + BN_EPS) * g + be

    h = lrelu(lin(x, w1, b1))
    h = lrelu(bn(lin(h, w2, b2), g2, be2))
    h = lrelu(bn(lin(h, w3, b3), g3, be3))
    h = lrelu(bn(lin(h, w4, b4), g4, be4))
    latent = jnp.tanh(lin(h, w5, b5))
    return lin(latent, wmu, bmu), lin(latent, wvar, bvar)


if __name__ == "__main__":
    key = jax.random.PRNGKey(0)
    k_param, k_in = jax.random.split(key)

    B = 4
    noise = jax.random.normal(k_in, (B, COORD_DIM), jnp.float32)
    raw = init_params(k_param)
    packed = pack_params(raw)

    mu, logvar = encoder_forward(noise, packed)
    jax.block_until_ready((mu, logvar))

    assert mu.shape == (B, LATENT_DIM) and logvar.shape == (B, LATENT_DIM)
    assert bool(jnp.all(jnp.isfinite(mu))) and bool(jnp.all(jnp.isfinite(logvar)))

    mu_ref, logvar_ref = encoder_reference(noise, raw)
    assert bool(jnp.allclose(mu, mu_ref, atol=5e-3, rtol=1e-2)), "mu mismatch"
    assert bool(jnp.allclose(logvar, logvar_ref, atol=5e-3, rtol=1e-2)), "logvar mismatch"

    print("KERNEL_OK")
</pallas_src>

<mosaic_0001>
module attributes {stable_mosaic.version = 11 : i64} {
  func.func @_encoder_kernel(%arg0: memref<8x512xf32, #tpu.memory_space<vmem>>, %arg1: memref<8x1xf32, #tpu.memory_space<vmem>>, %arg2: memref<16x512xf32, #tpu.memory_space<vmem>>, %arg3: memref<512x128xf32, #tpu.memory_space<vmem>>, %arg4: memref<128x128xf32, #tpu.memory_space<vmem>>, %arg5: memref<128x256xf32, #tpu.memory_space<vmem>>, %arg6: memref<256x512xf32, #tpu.memory_space<vmem>>, %arg7: memref<512x8xf32, #tpu.memory_space<vmem>>, %arg8: memref<8x8xf32, #tpu.memory_space<vmem>>, %arg9: memref<8x8xf32, #tpu.memory_space<vmem>>) attributes {dimension_semantics = [], scalar_prefetch = 0 : i64, scratch_operands = 0 : i64, tpu.core_type = #tpu.core_type<tc>} {
    %c0 = arith.constant 0 : index
    %c0_0 = arith.constant 0 : index
    %0 = vector.load %arg1[%c0, %c0_0] : memref<8x1xf32, #tpu.memory_space<vmem>>, vector<8x1xf32>
    %c0_1 = arith.constant 0 : index
    %c0_2 = arith.constant 0 : index
    %1 = vector.load %arg2[%c0_1, %c0_2] : memref<16x512xf32, #tpu.memory_space<vmem>>, vector<16x512xf32>
    %2 = vector.extract_strided_slice %1 {offsets = [0, 0], sizes = [1, 128], strides = [1, 1]} : vector<16x512xf32> to vector<1x128xf32>
    %3 = vector.extract_strided_slice %1 {offsets = [1, 0], sizes = [1, 128], strides = [1, 1]} : vector<16x512xf32> to vector<1x128xf32>
    %4 = vector.extract_strided_slice %1 {offsets = [2, 0], sizes = [1, 256], strides = [1, 1]} : vector<16x512xf32> to vector<1x256xf32>
    %5 = vector.extract_strided_slice %1 {offsets = [3, 0], sizes = [1, 512], strides = [1, 1]} : vector<16x512xf32> to vector<1x512xf32>
    %6 = vector.extract_strided_slice %1 {offsets = [4, 0], sizes = [1, 8], strides = [1, 1]} : vector<16x512xf32> to vector<1x8xf32>
    %7 = vector.extract_strided_slice %1 {offsets = [5, 0], sizes = [1, 8], strides = [1, 1]} : vector<16x512xf32> to vector<1x8xf32>
    %8 = vector.extract_strided_slice %1 {offsets = [6, 0], sizes = [1, 128], strides = [1, 1]} : vector<16x512xf32> to vector<1x128xf32>
    %9 = vector.extract_strided_slice %1 {offsets = [7, 0], sizes = [1, 128], strides = [1, 1]} : vector<16x512xf32> to vector<1x128xf32>
    %10 = vector.extract_strided_slice %1 {offsets = [8, 0], sizes = [1, 256], strides = [1, 1]} : vector<16x512xf32> to vector<1x256xf32>
    %11 = vector.extract_strided_slice %1 {offsets = [9, 0], sizes = [1, 256], strides = [1, 1]} : vector<16x512xf32> to vector<1x256xf32>
    %12 = vector.extract_strided_slice %1 {offsets = [10, 0], sizes = [1, 512], strides = [1, 1]} : vector<16x512xf32> to vector<1x512xf32>
    %13 = vector.extract_strided_slice %1 {offsets = [11, 0], sizes = [1, 512], strides = [1, 1]} : vector<16x512xf32> to vector<1x512xf32>
    %c0_3 = arith.constant 0 : index
    %c0_4 = arith.constant 0 : index
    %14 = vector.load %arg0[%c0_3, %c0_4] : memref<8x512xf32, #tpu.memory_space<vmem>>, vector<8x512xf32>
    %c0_5 = arith.constant 0 : index
    %c0_6 = arith.constant 0 : index
    %15 = vector.load %arg3[%c0_5, %c0_6] : memref<512x128xf32, #tpu.memory_space<vmem>>, vector<512x128xf32>
    %cst = arith.constant dense<0.000000e+00> : vector<8x128xf32>
    %16 = tpu.matmul %14, %15, %cst {dimension_numbers = #tpu.dot_dimension_numbers<[1], [0], [0], [1], [0, 0, 1, 1], [], []>} : vector<8x512xf32>, vector<512x128xf32>, vector<8x128xf32> -> vector<8x128xf32>
    %17 = vector.broadcast %2 : vector<1x128xf32> to vector<8x128xf32>
    %18 = arith.addf %16, %17 : vector<8x128xf32>
    %cst_7 = arith.constant 2.000000e-01 : f32
    %19 = vector.broadcast %cst_7 : f32 to vector<8x128xf32>
    %20 = arith.mulf %19, %18 : vector<8x128xf32>
    %21 = arith.maximumf %18, %20 : vector<8x128xf32>
    %c0_8 = arith.constant 0 : index
    %c0_9 = arith.constant 0 : index
    %22 = vector.load %arg4[%c0_8, %c0_9] : memref<128x128xf32, #tpu.memory_space<vmem>>, vector<128x128xf32>
    %cst_10 = arith.constant dense<0.000000e+00> : vector<8x128xf32>
    %23 = tpu.matmul %21, %22, %cst_10 {dimension_numbers = #tpu.dot_dimension_numbers<[1], [0], [0], [1], [0, 0, 1, 1], [], []>} : vector<8x128xf32>, vector<128x128xf32>, vector<8x128xf32> -> vector<8x128xf32>
    %24 = vector.broadcast %3 : vector<1x128xf32> to vector<8x128xf32>
    %25 = arith.addf %23, %24 : vector<8x128xf32>
    %26 = vector.broadcast %0 : vector<8x1xf32> to vector<8x128xf32>
    %27 = arith.mulf %25, %26 : vector<8x128xf32>
    %cst_11 = arith.constant dense<0.000000e+00> : vector<128xf32>
    %28 = vector.multi_reduction <add>, %27, %cst_11 [0] : vector<8x128xf32> to vector<128xf32>
    %29 = vector.shape_cast %28 : vector<128xf32> to vector<1x128xf32>
    %30 = vector.broadcast %29 : vector<1x128xf32> to vector<8x128xf32>
    %31 = arith.subf %25, %30 : vector<8x128xf32>
    %32 = arith.mulf %31, %31 : vector<8x128xf32>
    %33 = vector.broadcast %0 : vector<8x1xf32> to vector<8x128xf32>
    %34 = arith.mulf %32, %33 : vector<8x128xf32>
    %cst_12 = arith.constant dense<0.000000e+00> : vector<128xf32>
    %35 = vector.multi_reduction <add>, %34, %cst_12 [0] : vector<8x128xf32> to vector<128xf32>
    %36 = vector.shape_cast %35 : vector<128xf32> to vector<1x128xf32>
    %cst_13 = arith.constant 8.000000e-01 : f32
    %37 = vector.broadcast %cst_13 : f32 to vector<1x128xf32>
    %38 = arith.addf %36, %37 : vector<1x128xf32>
    %39 = math.rsqrt %38 : vector<1x128xf32>
    %40 = arith.mulf %8, %39 : vector<1x128xf32>
    %41 = arith.mulf %29, %40 : vector<1x128xf32>
    %42 = arith.subf %9, %41 : vector<1x128xf32>
    %43 = vector.broadcast %40 : vector<1x128xf32> to vector<8x128xf32>
    %44 = arith.mulf %25, %43 : vector<8x128xf32>
    %45 = vector.broadcast %42 : vector<1x128xf32> to vector<8x128xf32>
    %46 = arith.addf %44, %45 : vector<8x128xf32>
    %cst_14 = arith.constant 2.000000e-01 : f32
    %47 = vector.broadcast %cst_14 : f32 to vector<8x128xf32>
    %48 = arith.mulf %47, %46 : vector<8x128xf32>
    %49 = arith.maximumf %46, %48 : vector<8x128xf32>
    %c0_15 = arith.constant 0 : index
    %c0_16 = arith.constant 0 : index
    %50 = vector.load %arg5[%c0_15, %c0_16] : memref<128x256xf32, #tpu.memory_space<vmem>>, vector<128x256xf32>
    %cst_17 = arith.constant dense<0.000000e+00> : vector<8x256xf32>
    %51 = tpu.matmul %49, %50, %cst_17 {dimension_numbers = #tpu.dot_dimension_numbers<[1], [0], [0], [1], [0, 0, 1, 1], [], []>} : vector<8x128xf32>, vector<128x256xf32>, vector<8x256xf32> -> vector<8x256xf32>
    %52 = vector.broadcast %4 : vector<1x256xf32> to vector<8x256xf32>
    %53 = arith.addf %51, %52 : vector<8x256xf32>
    %54 = vector.broadcast %0 : vector<8x1xf32> to vector<8x256xf32>
    %55 = arith.mulf %53, %54 : vector<8x256xf32>
    %cst_18 = arith.constant dense<0.000000e+00> : vector<256xf32>
    %56 = vector.multi_reduction <add>, %55, %cst_18 [0] : vector<8x256xf32> to vector<256xf32>
    %57 = vector.shape_cast %56 : vector<256xf32> to vector<1x256xf32>
    %58 = vector.broadcast %57 : vector<1x256xf32> to vector<8x256xf32>
    %59 = arith.subf %53, %58 : vector<8x256xf32>
    %60 = arith.mulf %59, %59 : vector<8x256xf32>
    %61 = vector.broadcast %0 : vector<8x1xf32> to vector<8x256xf32>
    %62 = arith.mulf %60, %61 : vector<8x256xf32>
    %cst_19 = arith.constant dense<0.000000e+00> : vector<256xf32>
    %63 = vector.multi_reduction <add>, %62, %cst_19 [0] : vector<8x256xf32> to vector<256xf32>
    %64 = vector.shape_cast %63 : vector<256xf32> to vector<1x256xf32>
    %cst_20 = arith.constant 8.000000e-01 : f32
    %65 = vector.broadcast %cst_20 : f32 to vector<1x256xf32>
    %66 = arith.addf %64, %65 : vector<1x256xf32>
    %67 = math.rsqrt %66 : vector<1x256xf32>
    %68 = arith.mulf %10, %67 : vector<1x256xf32>
    %69 = arith.mulf %57, %68 : vector<1x256xf32>
    %70 = arith.subf %11, %69 : vector<1x256xf32>
    %71 = vector.broadcast %68 : vector<1x256xf32> to vector<8x256xf32>
    %72 = arith.mulf %53, %71 : vector<8x256xf32>
    %73 = vector.broadcast %70 : vector<1x256xf32> to vector<8x256xf32>
    %74 = arith.addf %72, %73 : vector<8x256xf32>
    %cst_21 = arith.constant 2.000000e-01 : f32
    %75 = vector.broadcast %cst_21 : f32 to vector<8x256xf32>
    %76 = arith.mulf %75, %74 : vector<8x256xf32>
    %77 = arith.maximumf %74, %76 : vector<8x256xf32>
    %c0_22 = arith.constant 0 : index
    %c0_23 = arith.constant 0 : index
    %78 = vector.load %arg6[%c0_22, %c0_23] : memref<256x512xf32, #tpu.memory_space<vmem>>, vector<256x512xf32>
    %cst_24 = arith.constant dense<0.000000e+00> : vector<8x512xf32>
    %79 = tpu.matmul %77, %78, %cst_24 {dimension_numbers = #tpu.dot_dimension_numbers<[1], [0], [0], [1], [0, 0, 1, 1], [], []>} : vector<8x256xf32>, vector<256x512xf32>, vector<8x512xf32> -> vector<8x512xf32>
    %80 = vector.broadcast %5 : vector<1x512xf32> to vector<8x512xf32>
    %81 = arith.addf %79, %80 : vector<8x512xf32>
    %82 = vector.broadcast %0 : vector<8x1xf32> to vector<8x512xf32>
    %83 = arith.mulf %81, %82 : vector<8x512xf32>
    %cst_25 = arith.constant dense<0.000000e+00> : vector<512xf32>
    %84 = vector.multi_reduction <add>, %83, %cst_25 [0] : vector<8x512xf32> to vector<512xf32>
    %85 = vector.shape_cast %84 : vector<512xf32> to vector<1x512xf32>
    %86 = vector.broadcast %85 : vector<1x512xf32> to vector<8x512xf32>
    %87 = arith.subf %81, %86 : vector<8x512xf32>
    %88 = arith.mulf %87, %87 : vector<8x512xf32>
    %89 = vector.broadcast %0 : vector<8x1xf32> to vector<8x512xf32>
    %90 = arith.mulf %88, %89 : vector<8x512xf32>
    %cst_26 = arith.constant dense<0.000000e+00> : vector<512xf32>
    %91 = vector.multi_reduction <add>, %90, %cst_26 [0] : vector<8x512xf32> to vector<512xf32>
    %92 = vector.shape_cast %91 : vector<512xf32> to vector<1x512xf32>
    %cst_27 = arith.constant 8.000000e-01 : f32
    %93 = vector.broadcast %cst_27 : f32 to vector<1x512xf32>
    %94 = arith.addf %92, %93 : vector<1x512xf32>
    %95 = math.rsqrt %94 : vector<1x512xf32>
    %96 = arith.mulf %12, %95 : vector<1x512xf32>
    %97 = arith.mulf %85, %96 : vector<1x512xf32>
    %98 = arith.subf %13, %97 : vector<1x512xf32>
    %99 = vector.broadcast %96 : vector<1x512xf32> to vector<8x512xf32>
    %100 = arith.mulf %81, %99 : vector<8x512xf32>
    %101 = vector.broadcast %98 : vector<1x512xf32> to vector<8x512xf32>
    %102 = arith.addf %100, %101 : vector<8x512xf32>
    %cst_28 = arith.constant 2.000000e-01 : f32
    %103 = vector.broadcast %cst_28 : f32 to vector<8x512xf32>
    %104 = arith.mulf %103, %102 : vector<8x512xf32>
    %105 = arith.maximumf %102, %104 : vector<8x512xf32>
    %c0_29 = arith.constant 0 : index
    %c0_30 = arith.constant 0 : index
    %106 = vector.load %arg7[%c0_29, %c0_30] : memref<512x8xf32, #tpu.memory_space<vmem>>, vector<512x8xf32>
    %cst_31 = arith.constant dense<0.000000e+00> : vector<8x8xf32>
    %107 = tpu.matmul %105, %106, %cst_31 {dimension_numbers = #tpu.dot_dimension_numbers<[1], [0], [0], [1], [0, 0, 1, 1], [], []>} : vector<8x512xf32>, vector<512x8xf32>, vector<8x8xf32> -> vector<8x8xf32>
    %108 = vector.broadcast %6 : vector<1x8xf32> to vector<8x8xf32>
    %109 = arith.addf %107, %108 : vector<8x8xf32>
    %110 = math.tanh %109 : vector<8x8xf32>
    %c0_32 = arith.constant 0 : index
    %c0_33 = arith.constant 0 : index
    %111 = vector.load %arg8[%c0_32, %c0_33] : memref<8x8xf32, #tpu.memory_space<vmem>>, vector<8x8xf32>
    %cst_34 = arith.constant dense<0.000000e+00> : vector<8x8xf32>
    %112 = tpu.matmul %110, %111, %cst_34 {dimension_numbers = #tpu.dot_dimension_numbers<[1], [0], [0], [1], [0, 0, 1, 1], [], []>} : vector<8x8xf32>, vector<8x8xf32>, vector<8x8xf32> -> vector<8x8xf32>
    %113 = vector.broadcast %7 : vector<1x8xf32> to vector<8x8xf32>
    %114 = arith.addf %112, %113 : vector<8x8xf32>
    %c0_35 = arith.constant 0 : index
    %c0_36 = arith.constant 0 : index
    %115 = vector.load %arg9[%c0_35, %c0_36] : memref<8x8xf32, #tpu.memory_space<vmem>>, vector<8x8xf32>
    tpu.vector_store %arg9[%c0_35, %c0_36], %114 {strides = array<i32>} : memref<8x8xf32, #tpu.memory_space<vmem>>, vector<8x8xf32>,
    return
  }
}

</mosaic_0001>

<bundles_post_ra>
// kernel: tpu_custom_call.1
= control target key start
LH: loop header
LB: loop body
LE: loop exit
PB: predicated region body
PF: predicated region fallthrough
CT: control target
= control target key end

     0   :  { %14 = vsyncpa [#allocation3], 0  ;;  %s2703_s0 = inlined_call_operand.vmem [shape: f32[8,512], index: 0, kind: input, shape index: {}]   ;;  %s2704_s1 = inlined_call_operand.vmem [shape: f32[8,1], index: 1, kind: input, shape index: {}]   ;;  %s2705_s2 = inlined_call_operand.hbm [shape: f32[16,512], index: 2, kind: input, shape index: {}]   ;;  %s2706_s3 = inlined_call_operand.vmem [shape: f32[512,128], index: 3, kind: input, shape index: {}]   ;;  %s2707_s4 = inlined_call_operand.hbm [shape: f32[128,128], index: 4, kind: input, shape index: {}]   ;;  %s2708_s5 = inlined_call_operand.hbm [shape: f32[128,256], index: 5, kind: input, shape index: {}]   ;;  %s2709_s6 = inlined_call_operand.hbm [shape: f32[256,512], index: 6, kind: input, shape index: {}]   ;;  %s2710_s7 = inlined_call_operand.vmem [shape: f32[512,8], index: 7, kind: input, shape index: {}]   ;;  %s2711_s8 = inlined_call_operand.hbm [shape: f32[8,8], index: 8, kind: input, shape index: {}]   ;;  %s2712_s9 = inlined_call_operand.hbm [shape: f32[8,8], index: 9, kind: output, shape index: {}]  }
   0x1   :  { %15 = vsyncpa [#allocation6], 0 }
   0x2   :  { %16 = vsyncpa [#allocation9], 0 }
   0x3   :  { %17 = vsyncpa [#allocation4], 0  ;;  %s2058_s30 = smov [#allocation5]   ;;  %s1918_s13 = scalar_lea.hbm %s2707_s4, 2048 }
   0x4   :  { %s41_s10 = sshll.u32 %s2058_s30, 4  ;;  %p1919_p0 = scmp.ne.s32.totalorder %s2707_s4, %s1918_s13  ;;  %s42_s10 = int_to_ptr.vmem [resolvable:$true] %s41_s10 }
   0x5   :  { %p1922_p1 = scmp.lt.u32.totalorder %s1918_s13, %s2707_s4 }
   0x7   :  { %p1924_p2 = pnand %p1922_p1, %p1919_p0 }
   0x9   :  { %1927 = shalt.err (!%p1924_p2)
}
   0xa   :  { %s1928_s18 = scalar_lea.vmem %s42_s10, 2048  ;;  %p1933_p4 = scmp.lt.s32.totalorder %s42_s10, %s42_s10 }
   0xb   :  { %p1929_p3 = scmp.ne.s32.totalorder %s42_s10, %s1928_s18  ;;  %p1934_p5 = scmp.lt.s32.totalorder %s1928_s18, %s1928_s18 }
   0xd   :  { %p1935_p6 = por %p1934_p5, %p1933_p4 }
   0xf   :  { %p1936_p7 = pnand %p1935_p6, %p1929_p3 }
  0x11   :  { %1939 = shalt.err (!%p1936_p7)
}
  0x12   :  { %s2059_s19 = smov 128   ;;  %s2060_s20 = smov 8  }
  0x13   :  { %47 = dma.hbm_to_vmem [thread:$0]  %s2707_s4, 2048, %s42_s10, [#allocation6], %s2059_s19, %s2059_s19, %s2060_s20  }
  0x14   :  { %s2061_s23 = smov [#allocation8]   ;;  %s2062_s25 = smov [#allocation2]  }
  0x15   :  { %s65_s24 = sshll.u32 %s2061_s23, 4  ;;  %s27_s26 = sshll.u32 %s2062_s25, 4  ;;  %s66_s24 = int_to_ptr.vmem [resolvable:$true] %s65_s24  ;;  %s28_s26 = int_to_ptr.vmem [resolvable:$true] %s27_s26 }
  0x16   :  { %s1940_s29 = scalar_lea.hbm %s2709_s6, 16384 }
  0x17   :  { %p1941_p8 = scmp.ne.s32.totalorder %s2709_s6, %s1940_s29  ;;  %p1944_p9 = scmp.lt.u32.totalorder %s1940_s29, %s2709_s6 }
  0x19   :  { %p1946_p10 = pnand %p1944_p9, %p1941_p8 }
  0x1b   :  { %1949 = shalt.err (!%p1946_p10)
}
  0x1c   :  { %s1950_s4 = scalar_lea.vmem %s66_s24, 16384  ;;  %p1955_p12 = scmp.lt.s32.totalorder %s66_s24, %s66_s24 }
  0x1d   :  { %p1951_p11 = scmp.ne.s32.totalorder %s66_s24, %s1950_s4  ;;  %p1956_p13 = scmp.lt.s32.totalorder %s1950_s4, %s1950_s4 }
  0x1f   :  { %p1957_p0 = por %p1956_p13, %p1955_p12 }
  0x21   :  { %p1958_p1 = pnand %p1957_p0, %p1951_p11 }
  0x23   :  { %1961 = shalt.err (!%p1958_p1)
}
  0x24   :  { %s2063_s10 = smov 512   ;;  %s2064_s14 = smov 32  }
  0x25   :  { %71 = dma.hbm_to_vmem [thread:$0]  %s2709_s6, 16384, %s66_s24, [#allocation9], %s2063_s10, %s2063_s10, %s2064_s14  }
  0x26   :  { %s1962_s19 = scalar_lea.hbm %s2705_s2, 1024 }
  0x27   :  { %p1963_p2 = scmp.ne.s32.totalorder %s2705_s2, %s1962_s19  ;;  %p1966_p3 = scmp.lt.u32.totalorder %s1962_s19, %s2705_s2 }
  0x29   :  { %p1968_p4 = pnand %p1966_p3, %p1963_p2 }
  0x2b   :  { %1971 = shalt.err (!%p1968_p4)
}
  0x2c   :  { %s1972_s25 = scalar_lea.vmem %s28_s26, 1024  ;;  %p1977_p6 = scmp.lt.s32.totalorder %s28_s26, %s28_s26 }
  0x2d   :  { %p1973_p5 = scmp.ne.s32.totalorder %s28_s26, %s1972_s25  ;;  %p1978_p7 = scmp.lt.s32.totalorder %s1972_s25, %s1972_s25 }
  0x2f   :  { %p1979_p8 = por %p1978_p7, %p1977_p6 }
  0x31   :  { %p1980_p9 = pnand %p1979_p8, %p1973_p5 }
  0x33   :  { %1983 = shalt.err (!%p1980_p9)
}
  0x34   :  { %33 = dma.hbm_to_vmem [thread:$0]  %s2705_s2, 1024, %s28_s26, [#allocation3], %s2063_s10, %s2063_s10, %s2064_s14  }
  0x35   :  { %s2065_s27 = smov [#allocation7]   ;;  %s1984_s11 = scalar_lea.hbm %s2708_s5, 4096 }
  0x36   :  { %s53_s28 = sshll.u32 %s2065_s27, 4  ;;  %p1985_p10 = scmp.ne.s32.totalorder %s2708_s5, %s1984_s11  ;;  %s54_s28 = int_to_ptr.vmem [resolvable:$true] %s53_s28 }
  0x37   :  { %p1988_p11 = scmp.lt.u32.totalorder %s1984_s11, %s2708_s5 }
  0x39   :  { %p1990_p12 = pnand %p1988_p11, %p1985_p10 }
  0x3b   :  { %1993 = shalt.err (!%p1990_p12)
}
  0x3c   :  { %s1994_s16 = scalar_lea.vmem %s54_s28, 4096  ;;  %p1999_p0 = scmp.lt.s32.totalorder %s54_s28, %s54_s28 }
  0x3d   :  { %p1995_p13 = scmp.ne.s32.totalorder %s54_s28, %s1994_s16  ;;  %p2000_p1 = scmp.lt.s32.totalorder %s1994_s16, %s1994_s16 }
  0x3f   :  { %p2001_p2 = por %p2000_p1, %p1999_p0 }
  0x41   :  { %p2002_p3 = pnand %p2001_p2, %p1995_p13 }
  0x43   :  { %2005 = shalt.err (!%p2002_p3)
}
  0x44   :  { %s2066_s2 = smov 256   ;;  %s2067_s26 = smov 16  }
  0x45   :  { %59 = dma.hbm_to_vmem [thread:$0]  %s2708_s5, 4096, %s54_s28, [#allocation6], %s2066_s2, %s2066_s2, %s2067_s26  }
  0x46   :  { %s2068_s17 = smov [#allocation10]   ;;  %s2006_s21 = scalar_lea.hbm %s2711_s8, 128 }
  0x47   :  { %s80_s18 = sshll.u32 %s2068_s17, 4  ;;  %p2007_p4 = scmp.ne.s32.totalorder %s2711_s8, %s2006_s21  ;;  %s81_s18 = int_to_ptr.vmem [resolvable:$true] %s80_s18 }
  0x48   :  { %p2010_p5 = scmp.lt.u32.totalorder %s2006_s21, %s2711_s8 }
  0x4a   :  { %p2012_p6 = pnand %p2010_p5, %p2007_p4 }
  0x4c   :  { %2015 = shalt.err (!%p2012_p6)
}
  0x4d   :  { %s2016_s24 = scalar_lea.vmem %s81_s18, 128  ;;  %p2021_p8 = scmp.lt.s32.totalorder %s81_s18, %s81_s18 }
  0x4e   :  { %p2017_p7 = scmp.ne.s32.totalorder %s81_s18, %s2016_s24  ;;  %p2022_p9 = scmp.lt.s32.totalorder %s2016_s24, %s2016_s24 }
  0x50   :  { %p2023_p10 = por %p2022_p9, %p2021_p8 }
  0x52   :  { %p2024_p11 = pnand %p2023_p10, %p2017_p7 }
  0x54   :  { %2027 = shalt.err (!%p2024_p11)
}
  0x55   :  { %83 = dma.hbm_to_vmem [thread:$0]  %s2711_s8, 128, %s81_s18, [#allocation9]  }
  0x56   :  { %2050 = dma.done.wait [#allocation3], 1024  }
  0x57   :  { %2051 = vsyncadd [#allocation3], 4294966272 }
  0x58   :  { %2052 = dma.done.wait [#allocation6], 6144  }
  0x59   :  { %2053 = vsyncadd [#allocation6], 4294961152 }
  0x5a   :  { %2054 = dma.done.wait [#allocation9], 16512  }
  0x5b   :  { %2055 = vsyncadd [#allocation9], 4294950784  ;;  %v128_v0 = vld [vmem:[%s2706_s3 + $0x80] sm:$0xff]  ;;  %v129_v1 = vld [vmem:[%s2706_s3 + $0x88] sm:$0xff]  ;;  %vm2070_vm0 = vmmov 0   ;;  %vm1280_vm1 = vcmask 64512  }
  0x5c   :  { %v112_v2 = vld [vmem:[%s2706_s3] sm:$0xff]  ;;  %v1572_v3 = vpack.c.bf16 %v129_v1, %v128_v0  ;;  %v113_v4 = vld [vmem:[%s2706_s3 + $0x8] sm:$0xff]  ;;  %v130_v11 = vld [vmem:[%s2706_s3 + $0x90] sm:$0xff] }
  0x5d   :  { %v160_v5 = vld [vmem:[%s2706_s3 + $0x180] sm:$0xff]  ;;  %v161_v6 = vld [vmem:[%s2706_s3 + $0x188] sm:$0xff]  ;;  %v1574_v7 = vpack.c.bf16 %v113_v4, %v112_v2  ;;  %v131_v13 = vld [vmem:[%s2706_s3 + $0x98] sm:$0xff] }
  0x5e   :  { %v1604_v8 = vpack.c.bf16 %v161_v6, %v160_v5  ;;  %v144_v9 = vld [vmem:[%s2706_s3 + $0x100] sm:$0xff]  ;;  %v145_v10 = vld [vmem:[%s2706_s3 + $0x108] sm:$0xff]  ;;  %1573 = vmatprep.subr.bf16.mxu0 %v1572_v3  ;;  %v114_v14 = vld [vmem:[%s2706_s3 + $0x10] sm:$0xff]  ;;  %v1576_v16 = vpack.c.bf16 %v131_v13, %v130_v11 }
  0x5f   :  { %v1606_v12 = vpack.c.bf16 %v145_v10, %v144_v9  ;;  %v115_v15 = vld [vmem:[%s2706_s3 + $0x18] sm:$0xff]  ;;  %1575 = vmatpush3.bf16.msra.mxu0 %v1574_v7  ;;  %v162_v18 = vld [vmem:[%s2706_s3 + $0x190] sm:$0xff]  ;;  %v132_v23 = vld [vmem:[%s2706_s3 + $0xa0] sm:$0xff] }
  0x60   :  { %1605 = vmatprep.subr.bf16.mxu1 %v1604_v8  ;;  %v1578_v17 = vpack.c.bf16 %v115_v15, %v114_v14  ;;  %v163_v19 = vld [vmem:[%s2706_s3 + $0x198] sm:$0xff]  ;;  %v146_v20 = vld [vmem:[%s2706_s3 + $0x110] sm:$0xff]  ;;  %v133_v24 = vld [vmem:[%s2706_s3 + $0xa8] sm:$0xff]  ;;  %1577 = vmatprep.subr.bf16.mxu0 %v1576_v16 }
  0x61   :  { %1607 = vmatpush3.bf16.msra.mxu1 %v1606_v12  ;;  %v1608_v21 = vpack.c.bf16 %v163_v19, %v162_v18  ;;  %v147_v22 = vld [vmem:[%s2706_s3 + $0x118] sm:$0xff]  ;;  %v1580_v26 = vpack.c.bf16 %v133_v24, %v132_v23  ;;  %v116_v27 = vld [vmem:[%s2706_s3 + $0x20] sm:$0xff]  ;;  %v117_v28 = vld [vmem:[%s2706_s3 + $0x28] sm:$0xff] }
  0x62   :  { %v1610_v25 = vpack.c.bf16 %v147_v22, %v146_v20  ;;  %v164_v29 = vld [vmem:[%s2706_s3 + $0x1a0] sm:$0xff]  ;;  %v165_v30 = vld [vmem:[%s2706_s3 + $0x1a8] sm:$0xff]  ;;  %v1582_v33 = vpack.c.bf16 %v117_v28, %v116_v27  ;;  %v134_v35 = vld [vmem:[%s2706_s3 + $0xb0] sm:$0xff] }
  0x63   :  { %1609 = vmatprep.subr.bf16.mxu1 %v1608_v21  ;;  %v148_v31 = vld [vmem:[%s2706_s3 + $0x120] sm:$0xff]  ;;  %v149_v32 = vld [vmem:[%s2706_s3 + $0x128] sm:$0xff]  ;;  %1579 = vmatpush3.bf16.msra.mxu0 %v1578_v17  ;;  %v1612_v34 = vpack.c.bf16 %v165_v30, %v164_v29  ;;  %v135_v36 = vld [vmem:[%s2706_s3 + $0xb8] sm:$0xff] }
  0x64   :  { %v118_v37 = vld [vmem:[%s2706_s3 + $0x30] sm:$0xff]  ;;  %1581 = vmatprep.subr.bf16.mxu0 %v1580_v26  ;;  %v1614_v38 = vpack.c.bf16 %v149_v32, %v148_v31  ;;  %v1584_v39 = vpack.c.bf16 %v135_v36, %v134_v35  ;;  %v119_v40 = vld [vmem:[%s2706_s3 + $0x38] sm:$0xff]  ;;  %v136_v46 = vld [vmem:[%s2706_s3 + $0xc0] sm:$0xff] }
  0x65   :  { %1611 = vmatpush3.bf16.msra.mxu1 %v1610_v25  ;;  %v166_v41 = vld [vmem:[%s2706_s3 + $0x1b0] sm:$0xff]  ;;  %v167_v42 = vld [vmem:[%s2706_s3 + $0x1b8] sm:$0xff]  ;;  %v137_v47 = vld [vmem:[%s2706_s3 + $0xc8] sm:$0xff]  ;;  %v1586_v48 = vpack.c.bf16 %v119_v40, %v118_v37 }
  0x66   :  { %1613 = vmatprep.subr.bf16.mxu1 %v1612_v34  ;;  %v1616_v43 = vpack.c.bf16 %v167_v42, %v166_v41  ;;  %v150_v44 = vld [vmem:[%s2706_s3 + $0x130] sm:$0xff]  ;;  %v151_v45 = vld [vmem:[%s2706_s3 + $0x138] sm:$0xff]  ;;  %v168_v49 = vld [vmem:[%s2706_s3 + $0x1c0] sm:$0xff]  ;;  %v1588_v52 = vpack.c.bf16 %v137_v47, %v136_v46 }
  0x67   :  { %1583 = vmatpush3.bf16.msra.mxu0 %v1582_v33  ;;  %v169_v50 = vld [vmem:[%s2706_s3 + $0x1c8] sm:$0xff]  ;;  %v1618_v51 = vpack.c.bf16 %v151_v45, %v150_v44  ;;  %v120_v53 = vld [vmem:[%s2706_s3 + $0x40] sm:$0xff]  ;;  %v138_v58 = vld [vmem:[%s2706_s3 + $0xd0] sm:$0xff] }
  0x68   :  { %1585 = vmatprep.subr.bf16.mxu0 %v1584_v39  ;;  %v121_v54 = vld [vmem:[%s2706_s3 + $0x48] sm:$0xff]  ;;  %v152_v55 = vld [vmem:[%s2706_s3 + $0x140] sm:$0xff]  ;;  %v1620_v56 = vpack.c.bf16 %v169_v50, %v168_v49  ;;  %v139_v59 = vld [vmem:[%s2706_s3 + $0xd8] sm:$0xff]  ;;  %v2069_v39 = vmov 0.0|0.0  }
  0x69   :  { %1615 = vmatpush3.bf16.msra.mxu1 %v1614_v38  ;;  %v153_v57 = vld [vmem:[%s2706_s3 + $0x148] sm:$0xff]  ;;  %v170_v60 = vld [vmem:[%s2706_s3 + $0x1d0] sm:$0xff]  ;;  %v171_v61 = vld [vmem:[%s2706_s3 + $0x1d8] sm:$0xff]  ;;  %v1590_v62 = vpack.c.bf16 %v121_v54, %v120_v53  ;;  %v1592_v0 = vpack.c.bf16 %v139_v59, %v138_v58 }
  0x6a   :  { %1617 = vmatprep.subr.bf16.mxu1 %v1616_v43  ;;  %v1622_v63 = vpack.c.bf16 %v153_v57, %v152_v55  ;;  %v122_v1 = vld [vmem:[%s2706_s3 + $0x50] sm:$0xff]  ;;  %v123_v2 = vld [vmem:[%s2706_s3 + $0x58] sm:$0xff]  ;;  %v1624_v4 = vpack.c.bf16 %v171_v61, %v170_v60  ;;  %v140_v6 = vld [vmem:[%s2706_s3 + $0xe0] sm:$0xff]  ;;  %v2071_v61 = vmov 0.0  }
  0x6b   :  { %1587 = vmatpush3.bf16.msra.mxu0 %v1586_v48  ;;  %v154_v3 = vld [vmem:[%s2706_s3 + $0x150] sm:$0xff]  ;;  %v155_v5 = vld [vmem:[%s2706_s3 + $0x158] sm:$0xff]  ;;  %v141_v7 = vld [vmem:[%s2706_s3 + $0xe8] sm:$0xff]  ;;  %v1594_v10 = vpack.c.bf16 %v123_v2, %v122_v1 }
  0x6c   :  { %1589 = vmatprep.subr.bf16.mxu0 %v1588_v52  ;;  %v172_v8 = vld [vmem:[%s2706_s3 + $0x1e0] sm:$0xff]  ;;  %v173_v9 = vld [vmem:[%s2706_s3 + $0x1e8] sm:$0xff]  ;;  %v1626_v13 = vpack.c.bf16 %v155_v5, %v154_v3  ;;  %v1596_v14 = vpack.c.bf16 %v141_v7, %v140_v6  ;;  %v142_v19 = vld [vmem:[%s2706_s3 + $0xf0] sm:$0xff] }
  0x6d   :  { %1619 = vmatpush3.bf16.msra.mxu1 %v1618_v51  ;;  %v124_v11 = vld [vmem:[%s2706_s3 + $0x60] sm:$0xff]  ;;  %v125_v12 = vld [vmem:[%s2706_s3 + $0x68] sm:$0xff]  ;;  %v1628_v18 = vpack.c.bf16 %v173_v9, %v172_v8  ;;  %v143_v20 = vld [vmem:[%s2706_s3 + $0xf8] sm:$0xff] }
  0x6e   :  { %1621 = vmatprep.subr.bf16.mxu1 %v1620_v56  ;;  %v156_v15 = vld [vmem:[%s2706_s3 + $0x160] sm:$0xff]  ;;  %v157_v16 = vld [vmem:[%s2706_s3 + $0x168] sm:$0xff]  ;;  %v111_v21 = vld [vmem:[%s2703_s0 + $0x18] sm:$0xff]  ;;  %v1598_v24 = vpack.c.bf16 %v125_v12, %v124_v11  ;;  %v1600_v26 = vpack.c.bf16 %v143_v20, %v142_v19 }
  0x6f   :  { %1591 = vmatpush3.bf16.msra.mxu0 %v1590_v62  ;;  %v109_v17 = vld [vmem:[%s2703_s0 + $0x8] sm:$0xff]  ;;  %v174_v22 = vld [vmem:[%s2706_s3 + $0x1f0] sm:$0xff]  ;;  %v175_v23 = vld [vmem:[%s2706_s3 + $0x1f8] sm:$0xff]  ;;  %314 = vmatprep.mubr.f32.mxu1 %v111_v21  ;;  %v1630_v25 = vpack.c.bf16 %v157_v16, %v156_v15 }
  0x70   :  { %1593 = vmatprep.subr.bf16.mxu0 %v1592_v0  ;;  %244 = vmatprep.mubr.f32.mxu0 %v109_v17  ;;  %v126_v27 = vld [vmem:[%s2706_s3 + $0x70] sm:$0xff]  ;;  %v127_v28 = vld [vmem:[%s2706_s3 + $0x78] sm:$0xff]  ;;  %v1632_v29 = vpack.c.bf16 %v175_v23, %v174_v22  ;;  %v322_v34 = vld [vmem:[#allocation5] sm:$0xff]  ;;  %v176_v0 = vlaneseq }
  0x71   :  { %1623 = vmatpush3.bf16.msra.mxu1 %v1622_v63  ;;  %v158_v30 = vld [vmem:[%s2706_s3 + $0x170] sm:$0xff]  ;;  %v159_v31 = vld [vmem:[%s2706_s3 + $0x178] sm:$0xff]  ;;  %v1602_v32 = vpack.c.bf16 %v127_v28, %v126_v27  ;;  %v323_v35 = vld [vmem:[#allocation5 + $0x8] sm:$0xff]  ;;  %v2072_v63 = vmov 0  }
  0x72   :  { %1625 = vmatprep.subr.bf16.mxu1 %v1624_v4  ;;  %v1634_v33 = vpack.c.bf16 %v159_v31, %v158_v30  ;;  %v108_v36 = vld [vmem:[%s2703_s0] sm:$0xff]  ;;  %v1637_v37 = vpack.c.bf16 %v323_v35, %v322_v34  ;;  %v110_v38 = vld [vmem:[%s2703_s0 + $0x10] sm:$0xff]  ;;  %v325_v41 = vld [vmem:[#allocation5 + $0x18] sm:$0xff]  ;;  %1900 = vset.pattern.permute.xlu0 %v2072_v63  ;;  %v2394_v1 = vshrl.u32 %v176_v0, 7 }
  0x73   :  { %1595 = vmatpush3.bf16.msra.mxu0 %v1594_v10  ;;  %v324_v40 = vld [vmem:[#allocation5 + $0x10] sm:$0xff]  ;;  %v326_v43 = vld [vmem:[#allocation5 + $0x20] sm:$0xff]  ;;  %v327_v44 = vld [vmem:[#allocation5 + $0x28] sm:$0xff] }
  0x74   :  { %1597 = vmatprep.subr.bf16.mxu0 %v1596_v14  ;;  %v1640_v42 = vpack.c.bf16 %v325_v41, %v324_v40  ;;  %v1643_v45 = vpack.c.bf16 %v327_v44, %v326_v43  ;;  %v328_v46 = vld [vmem:[#allocation5 + $0x30] sm:$0xff]  ;;  %v329_v47 = vld [vmem:[#allocation5 + $0x38] sm:$0xff]  ;;  %v330_v49 = vld [vmem:[#allocation5 + $0x40] sm:$0xff]  ;;  %v2397_v2 = vsub.s32 0, %v2394_v1  ;;  %v2404_v0 = vsub.s32 1, %v2394_v1 }
  0x75   :  { %1627 = vmatpush3.bf16.msra.mxu1 %v1626_v13  ;;  %v1646_v48 = vpack.c.bf16 %v329_v47, %v328_v46  ;;  %v331_v50 = vld [vmem:[#allocation5 + $0x48] sm:$0xff]  ;;  %v332_v52 = vld [vmem:[#allocation5 + $0x50] sm:$0xff]  ;;  %v333_v53 = vld [vmem:[#allocation5 + $0x58] sm:$0xff] }
  0x76   :  { %1629 = vmatprep.subr.bf16.mxu1 %v1628_v18  ;;  %v1649_v51 = vpack.c.bf16 %v331_v50, %v330_v49  ;;  %v1652_v54 = vpack.c.bf16 %v333_v53, %v332_v52  ;;  %v334_v55 = vld [vmem:[#allocation5 + $0x60] sm:$0xff]  ;;  %v335_v56 = vld [vmem:[#allocation5 + $0x68] sm:$0xff]  ;;  %v336_v58 = vld [vmem:[#allocation5 + $0x70] sm:$0xff] }
  0x77   :  { %1599 = vmatpush3.bf16.msra.mxu0 %v1598_v24  ;;  %v1655_v57 = vpack.c.bf16 %v335_v56, %v334_v55  ;;  %v337_v59 = vld [vmem:[#allocation5 + $0x78] sm:$0xff]  ;;  %v99_v62 = vld [vmem:[%s2704_s1] sm:$0xff]  ;;  %v454_v15 = vld [vmem:[#allocation7 + $0x8] sm:$0xff] }
  0x78   :  { %1601 = vmatprep.subr.bf16.mxu0 %v1600_v26  ;;  %v1658_v60 = vpack.c.bf16 %v337_v59, %v336_v58  ;;  %414 = vperm.xlu0 %1900, %v99_v62   ;;  %v2399_v3 = vld [vmem:[#allocation2] sm:$0xff]  ;;  %v456_v16 = vld [vmem:[#allocation7 + $0x18] sm:$0xff]  ;;  %v455_v19 = vld [vmem:[#allocation7 + $0x10] sm:$0xff] }
  0x79   :  { %1631 = vmatpush3.bf16.msra.mxu1 %v1630_v25  ;;  %v179_v5 = vrot.slane %v2399_v3, %v2397_v2  ;;  %v453_v17 = vld [vmem:[#allocation7] sm:$0xff]  ;;  %v1660_v18 = vpack.c.bf16 %v456_v16, %v454_v15  ;;  %v458_v20 = vld [vmem:[#allocation7 + $0x28] sm:$0xff]  ;;  %v460_v21 = vld [vmem:[#allocation7 + $0x38] sm:$0xff] }
  0x7a   :  { %1633 = vmatprep.subr.bf16.mxu1 %v1632_v29  ;;  %v1662_v22 = vpack.c.bf16 %v455_v19, %v453_v17  ;;  %v1664_v23 = vpack.c.bf16 %v460_v21, %v458_v20  ;;  %v457_v24 = vld [vmem:[#allocation7 + $0x20] sm:$0xff]  ;;  %v459_v25 = vld [vmem:[#allocation7 + $0x30] sm:$0xff]  ;;  %v462_v26 = vld [vmem:[#allocation7 + $0x48] sm:$0xff] }
  0x7b   :  { %1603 = vmatpush3.bf16.msra.mxu0 %v1602_v32  ;;  %v464_v27 = vld [vmem:[#allocation7 + $0x58] sm:$0xff]  ;;  %v1666_v28 = vpack.c.bf16 %v459_v25, %v457_v24  ;;  %v461_v30 = vld [vmem:[#allocation7 + $0x40] sm:$0xff]  ;;  %v463_v31 = vld [vmem:[#allocation7 + $0x50] sm:$0xff] }
  0x7c   :  { %1636 = vmatprep.subr.bf16.mxu0 %v2069_v39  ;;  %v1668_v29 = vpack.c.bf16 %v464_v27, %v462_v26  ;;  %v466_v32 = vld [vmem:[#allocation7 + $0x68] sm:$0xff]  ;;  %v1670_v34 = vpack.c.bf16 %v463_v31, %v461_v30  ;;  %v471_v43 = vld [vmem:[#allocation7 + $0x90] sm:$0xff] }
  0x7d   :  { %1635 = vmatpush3.bf16.msra.mxu1 %v1634_v33  ;;  %v468_v33 = vld [vmem:[#allocation7 + $0x78] sm:$0xff]  ;;  %v474_v44 = vld [vmem:[#allocation7 + $0xa8] sm:$0xff]  ;;  %v475_v49 = vld [vmem:[#allocation7 + $0xb0] sm:$0xff] }
  0x7e   :  { %245 = vmatmul.mubr.f32.vlgmr.msra.gmra.mrb[0].mxu0 %v108_v36  ;;  %1661 = vmatprep.subr.bf16.mxu1 %v1660_v18  ;;  %v1672_v35 = vpack.c.bf16 %v468_v33, %v466_v32  ;;  %v465_v36 = vld [vmem:[#allocation7 + $0x60] sm:$0xff]  ;;  %v478_v50 = vld [vmem:[#allocation7 + $0xc8] sm:$0xff]  ;;  %v479_v55 = vld [vmem:[#allocation7 + $0xd0] sm:$0xff]  ;;  %v448_v32 = vsub.s32 7, %v2394_v1 }
  0x7f   :  { %1638 = vmatpush3.bf16.msra.mxu0 %v1637_v37  ;;  %1564 = vmatprep.mubr.msk.f32.mxu0 %vm2070_vm0, %v2071_v61  ;;  %v467_v37 = vld [vmem:[#allocation7 + $0x70] sm:$0xff]  ;;  %v482_v56 = vld [vmem:[#allocation7 + $0xe8] sm:$0xff] }
  0x80   :  { %315 = vmatmul.mubr.f32.vlgmr.msra.gmra.mrb[0].mxu1 %v110_v38  ;;  %1639 = vmatprep.subr.bf16.mxu0 %v2069_v39  ;;  %v470_v38 = vld [vmem:[#allocation7 + $0x88] sm:$0xff]  ;;  %v1674_v40 = vpack.c.bf16 %v467_v37, %v465_v36  ;;  %v483_v62 = vld [vmem:[#allocation7 + $0xf0] sm:$0xff] }
  0x81   :  { %557 = vmatprep.mubr.f32.mxu1 %v2071_v61  ;;  %1663 = vmatpush1.bf16.msra.mxu1 %v1662_v22 }
  0x82   :  { %1665 = vmatprep.subr.bf16.mxu1 %v1664_v23 }
  0x83   :  { %1641 = vmatpush3.bf16.msra.mxu0 %v1640_v42  ;;  %v469_v42 = vld [vmem:[#allocation7 + $0x80] sm:$0xff] }
  0x84   :  { %1642 = vmatprep.subr.bf16.mxu0 %v2069_v39  ;;  %v1678_v46 = vpack.c.bf16 %v471_v43, %v469_v42  ;;  %v639_v42 = vld [vmem:[#allocation8 + $0x18] sm:$0xff] }
  0x85   :  { %1667 = vmatpush1.bf16.msra.mxu1 %v1666_v28  ;;  %v443_v28 = vsub.s32 6, %v2394_v1  ;;  %v643_v43 = vld [vmem:[#allocation8 + $0x38] sm:$0xff] }
  0x86   :  { %1669 = vmatprep.subr.bf16.mxu1 %v1668_v29 }
  0x87   :  { %1644 = vmatpush3.bf16.msra.mxu0 %v1643_v45  ;;  %v476_v45 = vld [vmem:[#allocation7 + $0xb8] sm:$0xff] }
  0x88   :  { %1645 = vmatprep.subr.bf16.mxu0 %v2069_v39  ;;  %v1680_v47 = vpack.c.bf16 %v476_v45, %v474_v44  ;;  %v636_v44 = vld [vmem:[#allocation8] sm:$0xff]  ;;  %v1756_v45 = vpack.c.bf16 %v643_v43, %v639_v42  ;;  %v681_v42 = vld [vmem:[#allocation8 + $0x168] sm:$0xff]  ;;  %v679_v43 = vld [vmem:[#allocation8 + $0x158] sm:$0xff] }
  0x89   :  { %1671 = vmatpush1.bf16.msra.mxu1 %v1670_v34 }
  0x8a   :  { %1673 = vmatprep.subr.bf16.mxu1 %v1672_v35 }
  0x8b   :  { %1647 = vmatpush3.bf16.msra.mxu0 %v1646_v48  ;;  %v473_v48 = vld [vmem:[#allocation7 + $0xa0] sm:$0xff] }
  0x8c   :  { %1648 = vmatprep.subr.bf16.mxu0 %v2069_v39  ;;  %v1682_v52 = vpack.c.bf16 %v475_v49, %v473_v48  ;;  %v642_v48 = vld [vmem:[#allocation8 + $0x30] sm:$0xff] }
  0x8d   :  { %1675 = vmatpush1.bf16.msra.mxu1 %v1674_v40  ;;  %v641_v40 = vld [vmem:[#allocation8 + $0x28] sm:$0xff] }
  0x8f   :  { %1650 = vmatpush3.bf16.msra.mxu0 %v1649_v51  ;;  %v480_v51 = vld [vmem:[#allocation7 + $0xd8] sm:$0xff] }
  0x90   :  { %1651 = vmatprep.subr.bf16.mxu0 %v2069_v39  ;;  %v1684_v53 = vpack.c.bf16 %v480_v51, %v478_v50  ;;  %v645_v51 = vld [vmem:[#allocation8 + $0x48] sm:$0xff] }
  0x93   :  { %1653 = vmatpush3.bf16.msra.mxu0 %v1652_v54  ;;  %v477_v54 = vld [vmem:[#allocation7 + $0xc0] sm:$0xff] }
  0x94   :  { %1654 = vmatprep.subr.bf16.mxu0 %v2069_v39  ;;  %v1686_v58 = vpack.c.bf16 %v479_v55, %v477_v54  ;;  %v651_v55 = vld [vmem:[#allocation8 + $0x78] sm:$0xff] }
  0x97   :  { %1656 = vmatpush3.bf16.msra.mxu0 %v1655_v57  ;;  %v484_v57 = vld [vmem:[#allocation7 + $0xf8] sm:$0xff] }
  0x98   :  { %1657 = vmatprep.subr.bf16.mxu0 %v2069_v39  ;;  %v472_v39 = vld [vmem:[#allocation7 + $0x98] sm:$0xff]  ;;  %v1688_v59 = vpack.c.bf16 %v484_v57, %v482_v56  ;;  %v644_v56 = vld [vmem:[#allocation8 + $0x40] sm:$0xff] }
  0x99   :  { %v1676_v41 = vpack.c.bf16 %v472_v39, %v470_v38  ;;  %v637_v39 = vld [vmem:[#allocation8 + $0x8] sm:$0xff]  ;;  %v648_v57 = vld [vmem:[#allocation8 + $0x60] sm:$0xff] }
  0x9b   :  { %1659 = vmatpush3.bf16.msra.mxu0 %v1658_v60  ;;  %1677 = vmatprep.subr.bf16.mxu1 %v1676_v41  ;;  %v481_v60 = vld [vmem:[#allocation7 + $0xe0] sm:$0xff]  ;;  %v1692_v41 = vpack.c.bf16 %v641_v40, %v637_v39  ;;  %v674_v39 = vld [vmem:[#allocation8 + $0x130] sm:$0xff] }
  0x9c   :  { %1679 = vmatpush1.bf16.msra.mxu1 %v1678_v46  ;;  %v1690_v63 = vpack.c.bf16 %v483_v62, %v481_v60  ;;  %v640_v46 = vld [vmem:[#allocation8 + $0x20] sm:$0xff]  ;;  %v646_v60 = vld [vmem:[#allocation8 + $0x50] sm:$0xff] }
  0x9d   :  { %1681 = vmatprep.subr.bf16.mxu1 %v1680_v47  ;;  %v638_v47 = vld [vmem:[#allocation8 + $0x10] sm:$0xff]  ;;  %1693 = vmatprep.subr.bf16.mxu0 %v1692_v41  ;;  %v1694_v49 = vpack.c.bf16 %v640_v46, %v636_v44  ;;  %v677_v41 = vld [vmem:[#allocation8 + $0x148] sm:$0xff]  ;;  %v676_v46 = vld [vmem:[#allocation8 + $0x140] sm:$0xff] }
  0x9e   :  { %v1758_v50 = vpack.c.bf16 %v642_v48, %v638_v47  ;;  %v650_v62 = vld [vmem:[#allocation8 + $0x70] sm:$0xff]  ;;  %v1712_v44 = vpack.c.bf16 %v681_v42, %v677_v41  ;;  %v680_v47 = vld [vmem:[#allocation8 + $0x160] sm:$0xff] }
  0x9f   :  { %v714_v41 = vld [vmem:[#allocation8 + $0x270] sm:$0xff] }
  0xa0   :  { %1683 = vmatpush1.bf16.msra.mxu1 %v1682_v52  ;;  %v649_v52 = vld [vmem:[#allocation8 + $0x68] sm:$0xff] }
  0xa1   :  { %1685 = vmatprep.subr.bf16.mxu1 %v1684_v53  ;;  %v647_v53 = vld [vmem:[#allocation8 + $0x58] sm:$0xff]  ;;  %v1696_v54 = vpack.c.bf16 %v649_v52, %v645_v51  ;;  %v682_v51 = vld [vmem:[#allocation8 + $0x170] sm:$0xff] }
  0xa4   :  { %1687 = vmatpush1.bf16.msra.mxu1 %v1686_v58  ;;  %v1760_v58 = vpack.c.bf16 %v651_v55, %v647_v53  ;;  %v685_v53 = vld [vmem:[#allocation8 + $0x188] sm:$0xff]  ;;  %v687_v55 = vld [vmem:[#allocation8 + $0x198] sm:$0xff] }
  0xa5   :  { %1689 = vmatprep.subr.bf16.mxu1 %v1688_v59  ;;  %v1698_v59 = vpack.c.bf16 %v648_v57, %v644_v56  ;;  %v691_v57 = vld [vmem:[#allocation8 + $0x1b8] sm:$0xff] }
  0xa8   :  { %1691 = vmatpush1.bf16.msra.mxu1 %v1690_v63  ;;  %v1762_v63 = vpack.c.bf16 %v650_v62, %v646_v60  ;;  %v1780_v60 = vpack.c.bf16 %v691_v57, %v687_v55  ;;  %v725_v55 = vld [vmem:[#allocation8 + $0x2c8] sm:$0xff]  ;;  %v727_v57 = vld [vmem:[#allocation8 + $0x2d8] sm:$0xff] }
  0xa9   :  { %1757 = vmatprep.subr.bf16.mxu1 %v1756_v45  ;;  %v683_v45 = vld [vmem:[#allocation8 + $0x178] sm:$0xff] }
  0xaa   :  { %v1776_v48 = vpack.c.bf16 %v683_v45, %v679_v43  ;;  %v717_v43 = vld [vmem:[#allocation8 + $0x288] sm:$0xff]  ;;  %v719_v45 = vld [vmem:[#allocation8 + $0x298] sm:$0xff] }
 0x151   :  { %v1405_v4 = vpop.f32.mrb[0].mxu0 }
 0x152   :  { %v1406_v6 = vpop.f32.mrb[1].mxu0 }
 0x153   :  { %v1440_v7 = vpop.f32.mrb[0].mxu1  ;;  %v1407_v8 = vadd.f32 %v1406_v6, %v1405_v4  ;;  %v341_v4 = vrot.slane %v2399_v3, %v2404_v0  ;;  %v2408_v6 = vpop.permute.xlu0 %414 }
 0x154   :  { %v1441_v9 = vpop.f32.mrb[1].mxu1 }
 0x155   :  { %v1442_v10 = vadd.f32 %v1441_v9, %v1440_v7  ;;  %v247_v11 = vadd.f32 %v1407_v8, %v179_v5 }
 0x157   :  { %v317_v12 = vadd.f32 %v1442_v10, %v247_v11 }
 0x159   :  { %v320_v13 = vmul.f32 0.2, %v317_v12 }
 0x15b   :  { %v321_v14 = vmax.f32 %v317_v12, %v320_v13 }
 0x15d   :  { %1565 = vmatmul.mubr.f32.vlgmr.msra.gmra.mrb[2].mxu0 %v321_v14 }
 0x15e   :  { %1695 = vmatpush1.bf16.msra.mxu0 %v1694_v49  ;;  %v1714_v49 = vpack.c.bf16 %v680_v47, %v676_v46  ;;  %v723_v47 = vld [vmem:[#allocation8 + $0x2b8] sm:$0xff] }
 0x15f   :  { %1697 = vmatprep.subr.bf16.mxu0 %v1696_v54  ;;  %v689_v54 = vld [vmem:[#allocation8 + $0x1a8] sm:$0xff] }
 0x160   :  { %v1716_v56 = vpack.c.bf16 %v689_v54, %v685_v53  ;;  %v722_v53 = vld [vmem:[#allocation8 + $0x2b0] sm:$0xff] }
 0x162   :  { %1699 = vmatpush1.bf16.msra.mxu0 %v1698_v59  ;;  %v688_v59 = vld [vmem:[#allocation8 + $0x1a0] sm:$0xff] }
 0x230   :  { %v408_v5 = vpop.f32.mrb[2].mxu0 }
 0x231   :  { %v409_v7 = vadd.f32 %v408_v5, %v341_v4  ;;  %v1566_v8 = vpop.f32.mrb[3].mxu0  ;;  %v653_v4 = vld [vmem:[#allocation8 + $0x88] sm:$0xff] }
 0x232   :  { %v657_v5 = vld [vmem:[#allocation8 + $0xa8] sm:$0xff] }
 0x233   :  { %v417_v9 = vmul.f32 %v2408_v6, %v409_v7  ;;  %v1700_v8 = vpack.c.bf16 %v657_v5, %v653_v4  ;;  %v690_v4 = vld [vmem:[#allocation8 + $0x1b0] sm:$0xff] }
 0x235   :  { %v418_v10 = vrot.slane %v417_v9, 4  ;;  %1701 = vmatprep.subr.bf16.mxu0 %v1700_v8  ;;  %v697_v8 = vld [vmem:[#allocation8 + $0x1e8] sm:$0xff] }
 0x237   :  { %v419_v11 = vadd.f32 %v418_v10, %v417_v9  ;;  %v659_v9 = vld [vmem:[#allocation8 + $0xb8] sm:$0xff]  ;;  %v652_v10 = vld [vmem:[#allocation8 + $0x80] sm:$0xff] }
 0x239   :  { %v420_v12 = vrot.slane %v419_v11, 2 }
 0x23b   :  { %v421_v13 = vadd.f32 %v420_v12, %v419_v11  ;;  %v656_v11 = vld [vmem:[#allocation8 + $0xa0] sm:$0xff] }
 0x23d   :  { %v422_v14 = vrot.slane %v421_v13, 1 }
 0x23f   :  { %v423_v15 = vadd.f32 %v422_v14, %v421_v13  ;;  %v1702_v13 = vpack.c.bf16 %v656_v11, %v652_v10  ;;  %v654_v14 = vld [vmem:[#allocation8 + $0x90] sm:$0xff]  ;;  %v699_v11 = vld [vmem:[#allocation8 + $0x1f8] sm:$0xff] }
 0x241   :  { %v424_v16 = vsub.f32 %v409_v7, %v423_v15  ;;  %1703 = vmatpush1.bf16.msra.mxu0 %v1702_v13  ;;  %v696_v13 = vld [vmem:[#allocation8 + $0x1e0] sm:$0xff] }
 0x243   :  { %v425_v17 = vmul.f32 %v424_v16, %v424_v16 }
 0x245   :  { %v426_v18 = vmul.f32 %v425_v17, %v2408_v6  ;;  %v661_v17 = vld [vmem:[#allocation8 + $0xc8] sm:$0xff] }
 0x247   :  { %v427_v19 = vrot.slane %v426_v18, 4 }
 0x249   :  { %v428_v20 = vadd.f32 %v427_v19, %v426_v18  ;;  %v665_v18 = vld [vmem:[#allocation8 + $0xe8] sm:$0xff]  ;;  %v663_v19 = vld [vmem:[#allocation8 + $0xd8] sm:$0xff] }
 0x24b   :  { %v429_v21 = vrot.slane %v428_v20, 2 }
 0x24d   :  { %v430_v22 = vadd.f32 %v429_v21, %v428_v20  ;;  %v1704_v20 = vpack.c.bf16 %v665_v18, %v661_v17  ;;  %v667_v21 = vld [vmem:[#allocation8 + $0xf8] sm:$0xff]  ;;  %v698_v17 = vld [vmem:[#allocation8 + $0x1f0] sm:$0xff] }
 0x24f   :  { %v431_v23 = vrot.slane %v430_v22, 1  ;;  %1705 = vmatprep.subr.bf16.mxu0 %v1704_v20  ;;  %v705_v20 = vld [vmem:[#allocation8 + $0x228] sm:$0xff] }
 0x251   :  { %v432_v24 = vadd.f32 %v431_v23, %v430_v22  ;;  %v660_v22 = vld [vmem:[#allocation8 + $0xc0] sm:$0xff] }
 0x252   :  { %v664_v23 = vld [vmem:[#allocation8 + $0xe0] sm:$0xff] }
 0x253   :  { %v433_v25 = vadd.f32 0.8, %v432_v24  ;;  %v1768_v24 = vpack.c.bf16 %v667_v21, %v663_v19  ;;  %v701_v19 = vld [vmem:[#allocation8 + $0x208] sm:$0xff]  ;;  %v703_v21 = vld [vmem:[#allocation8 + $0x218] sm:$0xff] }
 0x255   :  { %1901 = vrsqrt.f32 %v433_v25  ;;  %v1706_v25 = vpack.c.bf16 %v664_v23, %v660_v22  ;;  %v1724_v22 = vpack.c.bf16 %v705_v20, %v701_v19  ;;  %v707_v23 = vld [vmem:[#allocation8 + $0x238] sm:$0xff] }
 0x257   :  { %1707 = vmatpush1.bf16.msra.mxu0 %v1706_v25  ;;  %v704_v25 = vld [vmem:[#allocation8 + $0x220] sm:$0xff] }
 0x25f   :  { %v1902_v26 = vpop.eup %1901 }
 0x260   :  { %v435_v27 = vmul.f32 %v1902_v26, %v2399_v3  ;;  %v662_v26 = vld [vmem:[#allocation8 + $0xd0] sm:$0xff] }
 0x262   :  { %v436_v29 = vmul.f32 %v435_v27, %v423_v15  ;;  %v444_v31 = vrot.slane %v435_v27, %v443_v28  ;;  %v658_v15 = vld [vmem:[#allocation8 + $0xb0] sm:$0xff] }
 0x263   :  { %v1766_v16 = vpack.c.bf16 %v658_v15, %v654_v14  ;;  %v666_v27 = vld [vmem:[#allocation8 + $0xf0] sm:$0xff] }
 0x264   :  { %v438_v30 = vrot.slane %v436_v29, 7  ;;  %v445_v34 = vmul.f32 %v444_v31, %v409_v7  ;;  %v655_v7 = vld [vmem:[#allocation8 + $0x98] sm:$0xff]  ;;  %v1770_v28 = vpack.c.bf16 %v666_v27, %v662_v26  ;;  %v669_v29 = vld [vmem:[#allocation8 + $0x108] sm:$0xff]  ;;  %v1788_v26 = vpack.c.bf16 %v707_v23, %v703_v21 }
 0x265   :  { %v1764_v12 = vpack.c.bf16 %v659_v9, %v655_v7  ;;  %v671_v31 = vld [vmem:[#allocation8 + $0x118] sm:$0xff]  ;;  %v693_v7 = vld [vmem:[#allocation8 + $0x1c8] sm:$0xff] }
 0x266   :  { %v440_v33 = vsub.f32 %v2399_v3, %v438_v30  ;;  %v673_v30 = vld [vmem:[#allocation8 + $0x128] sm:$0xff]  ;;  %v695_v9 = vld [vmem:[#allocation8 + $0x1d8] sm:$0xff]  ;;  %v1720_v10 = vpack.c.bf16 %v697_v8, %v693_v7  ;;  %v730_v7 = vld [vmem:[#allocation8 + $0x2f0] sm:$0xff] }
 0x267   :  { %v1784_v14 = vpack.c.bf16 %v699_v11, %v695_v9  ;;  %v733_v9 = vld [vmem:[#allocation8 + $0x308] sm:$0xff]  ;;  %v735_v11 = vld [vmem:[#allocation8 + $0x318] sm:$0xff] }
 0x268   :  { %v449_v35 = vrot.slane %v440_v33, %v448_v32  ;;  %v1708_v32 = vpack.c.bf16 %v673_v30, %v669_v29  ;;  %v675_v33 = vld [vmem:[#allocation8 + $0x138] sm:$0xff]  ;;  %v706_v29 = vld [vmem:[#allocation8 + $0x230] sm:$0xff]  ;;  %v741_v21 = vld [vmem:[#allocation8 + $0x348] sm:$0xff] }
 0x269   :  { %v743_v23 = vld [vmem:[#allocation8 + $0x358] sm:$0xff] }
 0x26a   :  { %v450_v36 = vadd.f32 %v449_v35, %v445_v34  ;;  %v668_v34 = vld [vmem:[#allocation8 + $0x100] sm:$0xff]  ;;  %1709 = vmatprep.subr.bf16.mxu0 %v1708_v32  ;;  %v713_v32 = vld [vmem:[#allocation8 + $0x268] sm:$0xff] }
 0x26b   :  { %v672_v35 = vld [vmem:[#allocation8 + $0x120] sm:$0xff] }
 0x26c   :  { %v451_v37 = vmul.f32 0.2, %v450_v36 }
 0x26e   :  { %v452_v38 = vmax.f32 %v450_v36, %v451_v37  ;;  %v1772_v36 = vpack.c.bf16 %v675_v33, %v671_v31  ;;  %v1710_v37 = vpack.c.bf16 %v672_v35, %v668_v34  ;;  %v709_v31 = vld [vmem:[#allocation8 + $0x248] sm:$0xff]  ;;  %v711_v33 = vld [vmem:[#allocation8 + $0x258] sm:$0xff] }
 0x26f   :  { %v1728_v34 = vpack.c.bf16 %v713_v32, %v709_v31  ;;  %v715_v35 = vld [vmem:[#allocation8 + $0x278] sm:$0xff]  ;;  %v746_v31 = vld [vmem:[#allocation8 + $0x370] sm:$0xff] }
 0x270   :  { %558 = vmatmul.mubr.f32.vlgmr.msra.gmra.mrb[2].mxu1 %v452_v38  ;;  %v670_v38 = vld [vmem:[#allocation8 + $0x110] sm:$0xff]  ;;  %1711 = vmatpush1.bf16.msra.mxu0 %v1710_v37  ;;  %v712_v37 = vld [vmem:[#allocation8 + $0x260] sm:$0xff] }
 0x271   :  { %1759 = vmatpush1.bf16.msra.mxu1 %v1758_v50  ;;  %v1774_v40 = vpack.c.bf16 %v674_v39, %v670_v38  ;;  %v678_v50 = vld [vmem:[#allocation8 + $0x150] sm:$0xff]  ;;  %1713 = vmatprep.subr.bf16.mxu0 %v1712_v44  ;;  %v1792_v38 = vpack.c.bf16 %v715_v35, %v711_v33  ;;  %v721_v44 = vld [vmem:[#allocation8 + $0x2a8] sm:$0xff]  ;;  %v751_v35 = vld [vmem:[#allocation8 + $0x398] sm:$0xff] }
 0x272   :  { %1761 = vmatprep.subr.bf16.mxu1 %v1760_v58  ;;  %v1778_v52 = vpack.c.bf16 %v682_v51, %v678_v50  ;;  %v684_v58 = vld [vmem:[#allocation8 + $0x180] sm:$0xff]  ;;  %v1732_v46 = vpack.c.bf16 %v721_v44, %v717_v43  ;;  %v1796_v50 = vpack.c.bf16 %v723_v47, %v719_v45  ;;  %v749_v33 = vld [vmem:[#allocation8 + $0x388] sm:$0xff]  ;;  %v754_v43 = vld [vmem:[#allocation8 + $0x3b0] sm:$0xff] }
 0x273   :  { %v1718_v62 = vpack.c.bf16 %v688_v59, %v684_v58  ;;  %v731_v59 = vld [vmem:[#allocation8 + $0x2f8] sm:$0xff]  ;;  %v757_v45 = vld [vmem:[#allocation8 + $0x3c8] sm:$0xff] }
 0x274   :  { %1715 = vmatpush1.bf16.msra.mxu0 %v1714_v49  ;;  %v720_v49 = vld [vmem:[#allocation8 + $0x2a0] sm:$0xff]  ;;  %v759_v47 = vld [vmem:[#allocation8 + $0x3d8] sm:$0xff] }
 0x275   :  { %1763 = vmatpush1.bf16.msra.mxu1 %v1762_v63  ;;  %v686_v63 = vld [vmem:[#allocation8 + $0x190] sm:$0xff]  ;;  %1717 = vmatprep.subr.bf16.mxu0 %v1716_v56  ;;  %v729_v56 = vld [vmem:[#allocation8 + $0x2e8] sm:$0xff] }
 0x276   :  { %1765 = vmatprep.subr.bf16.mxu1 %v1764_v12  ;;  %v1782_v5 = vpack.c.bf16 %v690_v4, %v686_v63  ;;  %v692_v12 = vld [vmem:[#allocation8 + $0x1c0] sm:$0xff]  ;;  %v1736_v58 = vpack.c.bf16 %v729_v56, %v725_v55  ;;  %v1800_v63 = vpack.c.bf16 %v731_v59, %v727_v57  ;;  %v762_v55 = vld [vmem:[#allocation8 + $0x3f0] sm:$0xff]  ;;  %v2417_v57 = vsub.s32 2, %v2394_v1 }
 0x277   :  { %v1722_v15 = vpack.c.bf16 %v696_v13, %v692_v12  ;;  %v739_v13 = vld [vmem:[#allocation8 + $0x338] sm:$0xff] }
 0x278   :  { %1719 = vmatpush1.bf16.msra.mxu0 %v1718_v62  ;;  %v728_v62 = vld [vmem:[#allocation8 + $0x2e0] sm:$0xff]  ;;  %v488_v59 = vrot.slane %v2399_v3, %v2417_v57 }
 0x279   :  { %1767 = vmatpush1.bf16.msra.mxu1 %v1766_v16  ;;  %v694_v16 = vld [vmem:[#allocation8 + $0x1d0] sm:$0xff]  ;;  %1721 = vmatprep.subr.bf16.mxu0 %v1720_v10  ;;  %v737_v10 = vld [vmem:[#allocation8 + $0x328] sm:$0xff] }
 0x27a   :  { %1769 = vmatprep.subr.bf16.mxu1 %v1768_v24  ;;  %v1786_v18 = vpack.c.bf16 %v698_v17, %v694_v16  ;;  %v700_v24 = vld [vmem:[#allocation8 + $0x200] sm:$0xff]  ;;  %v1740_v12 = vpack.c.bf16 %v737_v10, %v733_v9  ;;  %v734_v17 = vld [vmem:[#allocation8 + $0x310] sm:$0xff] }
 0x27b   :  { %v1726_v27 = vpack.c.bf16 %v704_v25, %v700_v24  ;;  %v736_v16 = vld [vmem:[#allocation8 + $0x320] sm:$0xff]  ;;  %v747_v25 = vld [vmem:[#allocation8 + $0x378] sm:$0xff] }
 0x27c   :  { %1723 = vmatpush1.bf16.msra.mxu0 %v1722_v15  ;;  %v1804_v15 = vpack.c.bf16 %v739_v13, %v735_v11 }
 0x27d   :  { %1771 = vmatpush1.bf16.msra.mxu1 %v1770_v28  ;;  %v702_v28 = vld [vmem:[#allocation8 + $0x210] sm:$0xff]  ;;  %1725 = vmatprep.subr.bf16.mxu0 %v1724_v22  ;;  %v745_v22 = vld [vmem:[#allocation8 + $0x368] sm:$0xff] }
 0x27e   :  { %1773 = vmatprep.subr.bf16.mxu1 %v1772_v36  ;;  %v1790_v30 = vpack.c.bf16 %v706_v29, %v702_v28  ;;  %v708_v36 = vld [vmem:[#allocation8 + $0x240] sm:$0xff]  ;;  %v1744_v24 = vpack.c.bf16 %v745_v22, %v741_v21  ;;  %v1808_v28 = vpack.c.bf16 %v747_v25, %v743_v23 }
 0x27f   :  { %v1730_v39 = vpack.c.bf16 %v712_v37, %v708_v36  ;;  %v755_v37 = vld [vmem:[#allocation8 + $0x3b8] sm:$0xff] }
 0x280   :  { %1727 = vmatpush1.bf16.msra.mxu0 %v1726_v27  ;;  %v744_v27 = vld [vmem:[#allocation8 + $0x360] sm:$0xff] }
 0x281   :  { %1775 = vmatpush1.bf16.msra.mxu1 %v1774_v40  ;;  %v710_v40 = vld [vmem:[#allocation8 + $0x250] sm:$0xff]  ;;  %1729 = vmatprep.subr.bf16.mxu0 %v1728_v34  ;;  %v753_v34 = vld [vmem:[#allocation8 + $0x3a8] sm:$0xff] }
 0x282   :  { %1777 = vmatprep.subr.bf16.mxu1 %v1776_v48  ;;  %v1794_v42 = vpack.c.bf16 %v714_v41, %v710_v40  ;;  %v716_v48 = vld [vmem:[#allocation8 + $0x280] sm:$0xff]  ;;  %v1748_v36 = vpack.c.bf16 %v753_v34, %v749_v33  ;;  %v1812_v40 = vpack.c.bf16 %v755_v37, %v751_v35 }
 0x283   :  { %v1734_v51 = vpack.c.bf16 %v720_v49, %v716_v48  ;;  %v763_v49 = vld [vmem:[#allocation8 + $0x3f8] sm:$0xff] }
 0x284   :  { %1731 = vmatpush1.bf16.msra.mxu0 %v1730_v39  ;;  %v752_v39 = vld [vmem:[#allocation8 + $0x3a0] sm:$0xff] }
 0x285   :  { %1779 = vmatpush1.bf16.msra.mxu1 %v1778_v52  ;;  %v718_v52 = vld [vmem:[#allocation8 + $0x290] sm:$0xff]  ;;  %1733 = vmatprep.subr.bf16.mxu0 %v1732_v46  ;;  %v761_v46 = vld [vmem:[#allocation8 + $0x3e8] sm:$0xff] }
 0x286   :  { %1781 = vmatprep.subr.bf16.mxu1 %v1780_v60  ;;  %v1798_v54 = vpack.c.bf16 %v722_v53, %v718_v52  ;;  %v724_v60 = vld [vmem:[#allocation8 + $0x2c0] sm:$0xff]  ;;  %v1752_v48 = vpack.c.bf16 %v761_v46, %v757_v45  ;;  %v1816_v52 = vpack.c.bf16 %v763_v49, %v759_v47 }
 0x287   :  { %v1738_v4 = vpack.c.bf16 %v728_v62, %v724_v60 }
 0x288   :  { %1735 = vmatpush1.bf16.msra.mxu0 %v1734_v51  ;;  %v760_v51 = vld [vmem:[#allocation8 + $0x3e0] sm:$0xff] }
 0x289   :  { %1783 = vmatpush1.bf16.msra.mxu1 %v1782_v5  ;;  %v726_v5 = vld [vmem:[#allocation8 + $0x2d0] sm:$0xff]  ;;  %1737 = vmatprep.subr.bf16.mxu0 %v1736_v58  ;;  %v2419_v58 = vld [vmem:[#allocation2 + $0x8] sm:$0xff] }
 0x28a   :  { %1785 = vmatprep.subr.bf16.mxu1 %v1784_v14  ;;  %v1802_v8 = vpack.c.bf16 %v730_v7, %v726_v5  ;;  %v732_v14 = vld [vmem:[#allocation8 + $0x300] sm:$0xff]  ;;  %v492_v60 = vrot.slane %v2419_v58, %v2417_v57 }
 0x28b   :  { %v1742_v19 = vpack.c.bf16 %v736_v16, %v732_v14 }
 0x28c   :  { %1739 = vmatpush1.bf16.msra.mxu0 %v1738_v4 }
 0x28d   :  { %1787 = vmatpush1.bf16.msra.mxu1 %v1786_v18  ;;  %v738_v18 = vld [vmem:[#allocation8 + $0x330] sm:$0xff]  ;;  %1741 = vmatprep.subr.bf16.mxu0 %v1740_v12 }
 0x28e   :  { %1789 = vmatprep.subr.bf16.mxu1 %v1788_v26  ;;  %v1806_v20 = vpack.c.bf16 %v738_v18, %v734_v17  ;;  %v740_v26 = vld [vmem:[#allocation8 + $0x340] sm:$0xff] }
 0x28f   :  { %v1746_v29 = vpack.c.bf16 %v744_v27, %v740_v26 }
 0x290   :  { %1743 = vmatpush1.bf16.msra.mxu0 %v1742_v19 }
 0x291   :  { %1791 = vmatpush1.bf16.msra.mxu1 %v1790_v30  ;;  %v742_v30 = vld [vmem:[#allocation8 + $0x350] sm:$0xff]  ;;  %1745 = vmatprep.subr.bf16.mxu0 %v1744_v24 }
 0x292   :  { %1793 = vmatprep.subr.bf16.mxu1 %v1792_v38  ;;  %v1810_v32 = vpack.c.bf16 %v746_v31, %v742_v30  ;;  %v748_v38 = vld [vmem:[#allocation8 + $0x380] sm:$0xff] }
 0x293   :  { %v1750_v41 = vpack.c.bf16 %v752_v39, %v748_v38 }
 0x294   :  { %1747 = vmatpush1.bf16.msra.mxu0 %v1746_v29 }
 0x295   :  { %1795 = vmatpush1.bf16.msra.mxu1 %v1794_v42  ;;  %v750_v42 = vld [vmem:[#allocation8 + $0x390] sm:$0xff]  ;;  %1749 = vmatprep.subr.bf16.mxu0 %v1748_v36 }
 0x296   :  { %1797 = vmatprep.subr.bf16.mxu1 %v1796_v50  ;;  %v1814_v44 = vpack.c.bf16 %v754_v43, %v750_v42  ;;  %v756_v50 = vld [vmem:[#allocation8 + $0x3c0] sm:$0xff] }
 0x297   :  { %v1754_v53 = vpack.c.bf16 %v760_v51, %v756_v50 }
 0x298   :  { %1751 = vmatpush1.bf16.msra.mxu0 %v1750_v41  ;;  %v2431_v41 = vld [vmem:[#allocation2 + $0x28] sm:$0xff] }
 0x299   :  { %1799 = vmatpush1.bf16.msra.mxu1 %v1798_v54  ;;  %v758_v54 = vld [vmem:[#allocation8 + $0x3d0] sm:$0xff]  ;;  %1753 = vmatprep.subr.bf16.mxu0 %v1752_v48 }
 0x29a   :  { %1801 = vmatprep.subr.bf16.mxu1 %v1800_v63  ;;  %v1818_v56 = vpack.c.bf16 %v762_v55, %v758_v54 }
 0x29c   :  { %1755 = vmatpush1.bf16.msra.mxu0 %v1754_v53 }
 0x29d   :  { %1803 = vmatpush1.bf16.msra.mxu1 %v1802_v8 }
 0x29e   :  { %1805 = vmatprep.subr.bf16.mxu1 %v1804_v15 }
 0x2a1   :  { %1807 = vmatpush1.bf16.msra.mxu1 %v1806_v20 }
 0x2a2   :  { %1809 = vmatprep.subr.bf16.mxu1 %v1808_v28 }
 0x2a5   :  { %1811 = vmatpush1.bf16.msra.mxu1 %v1810_v32 }
 0x2a6   :  { %1813 = vmatprep.subr.bf16.mxu1 %v1812_v40  ;;  %v2429_v40 = vld [vmem:[#allocation2 + $0x20] sm:$0xff] }
 0x2a9   :  { %1815 = vmatpush1.bf16.msra.mxu1 %v1814_v44 }
 0x2aa   :  { %1817 = vmatprep.subr.bf16.mxu1 %v1816_v52 }
 0x2ad   :  { %1819 = vmatpush1.bf16.msra.mxu1 %v1818_v56 }
 0x343   :  { %v559_v62 = vpop.f32.mrb[2].mxu1 }
 0x344   :  { %v560_v63 = vadd.f32 %v559_v62, %v488_v59  ;;  %v561_v4 = vpop.f32.mrb[3].mxu1 }
 0x345   :  { %v562_v5 = vadd.f32 %v561_v4, %v492_v60 }
 0x346   :  { %v564_v7 = vmul.f32 %v560_v63, %v2408_v6 }
 0x347   :  { %v565_v8 = vmul.f32 %v562_v5, %v2408_v6 }
 0x348   :  { %v566_v9 = vrot.slane %v564_v7, 4 }
 0x349   :  { %v572_v10 = vrot.slane %v565_v8, 4 }
 0x34a   :  { %v567_v11 = vadd.f32 %v566_v9, %v564_v7 }
 0x34b   :  { %v573_v12 = vadd.f32 %v572_v10, %v565_v8  ;;  %v1115_v10 = vld [vmem:[%s2710_s7 + $0x188] sm:$0xff] }
 0x34c   :  { %v568_v13 = vrot.slane %v567_v11, 2 }
 0x34d   :  { %v574_v14 = vrot.slane %v573_v12, 2 }
 0x34e   :  { %v569_v15 = vadd.f32 %v568_v13, %v567_v11  ;;  %v1066_v11 = vld [vmem:[%s2710_s7] sm:$0xff] }
 0x34f   :  { %v575_v16 = vadd.f32 %v574_v14, %v573_v12  ;;  %v1067_v12 = vld [vmem:[%s2710_s7 + $0x8] sm:$0xff] }
 0x350   :  { %v570_v3 = vrot.slane %v569_v15, 1  ;;  %v1822_v14 = vpack.c.bf16 %v1067_v12, %v1066_v11  ;;  %v1124_v11 = vld [vmem:[%s2710_s7 + $0x1d0] sm:$0xff] }
 0x351   :  { %v576_v17 = vrot.slane %v575_v16, 1 }
 0x352   :  { %v571_v18 = vadd.f32 %v570_v3, %v569_v15  ;;  %v1098_v15 = vld [vmem:[%s2710_s7 + $0x100] sm:$0xff] }
 0x353   :  { %v577_v19 = vadd.f32 %v576_v17, %v575_v16  ;;  %v1099_v16 = vld [vmem:[%s2710_s7 + $0x108] sm:$0xff]  ;;  %v1084_v17 = vld [vmem:[%s2710_s7 + $0x90] sm:$0xff] }
 0x354   :  { %v578_v20 = vsub.f32 %v560_v63, %v571_v18  ;;  %v1854_v3 = vpack.c.bf16 %v1099_v16, %v1098_v15  ;;  %v1077_v15 = vld [vmem:[%s2710_s7 + $0x58] sm:$0xff] }
 0x355   :  { %v579_v21 = vsub.f32 %v562_v5, %v577_v19 }
 0x356   :  { %v580_v22 = vmul.f32 %v578_v20, %v578_v20 }
 0x357   :  { %v581_v23 = vmul.f32 %v579_v21, %v579_v21  ;;  %v1117_v21 = vld [vmem:[%s2710_s7 + $0x198] sm:$0xff] }
 0x358   :  { %v582_v24 = vmul.f32 %v580_v22, %v2408_v6  ;;  %v1068_v22 = vld [vmem:[%s2710_s7 + $0x10] sm:$0xff] }
 0x359   :  { %v583_v25 = vmul.f32 %v581_v23, %v2408_v6  ;;  %v1069_v23 = vld [vmem:[%s2710_s7 + $0x18] sm:$0xff] }
 0x35a   :  { %v584_v26 = vrot.slane %v582_v24, 4 }
 0x35b   :  { %v590_v27 = vrot.slane %v583_v25, 4 }
 0x35c   :  { %v585_v28 = vadd.f32 %v584_v26, %v582_v24  ;;  %v1100_v26 = vld [vmem:[%s2710_s7 + $0x110] sm:$0xff] }
 0x35d   :  { %v591_v29 = vadd.f32 %v590_v27, %v583_v25  ;;  %v1826_v25 = vpack.c.bf16 %v1069_v23, %v1068_v22  ;;  %v1101_v27 = vld [vmem:[%s2710_s7 + $0x118] sm:$0xff]  ;;  %v1126_v22 = vld [vmem:[%s2710_s7 + $0x1e0] sm:$0xff] }
 0x35e   :  { %v586_v30 = vrot.slane %v585_v28, 2 }
 0x35f   :  { %v592_v31 = vrot.slane %v591_v29, 2 }
 0x360   :  { %v587_v32 = vadd.f32 %v586_v30, %v585_v28  ;;  %v1858_v28 = vpack.c.bf16 %v1101_v27, %v1100_v26  ;;  %v1087_v30 = vld [vmem:[%s2710_s7 + $0xa8] sm:$0xff] }
 0x361   :  { %v593_v33 = vadd.f32 %v592_v31, %v591_v29  ;;  %v1086_v29 = vld [vmem:[%s2710_s7 + $0xa0] sm:$0xff]  ;;  %v1079_v26 = vld [vmem:[%s2710_s7 + $0x68] sm:$0xff] }
 0x362   :  { %v588_v34 = vrot.slane %v587_v32, 1  ;;  %v1118_v31 = vld [vmem:[%s2710_s7 + $0x1a0] sm:$0xff] }
 0x363   :  { %v594_v35 = vrot.slane %v593_v33, 1 }
 0x364   :  { %v589_v36 = vadd.f32 %v588_v34, %v587_v32  ;;  %v1828_v32 = vpack.c.bf16 %v1087_v30, %v1086_v29  ;;  %v1070_v34 = vld [vmem:[%s2710_s7 + $0x20] sm:$0xff]  ;;  %v1111_v30 = vld [vmem:[%s2710_s7 + $0x168] sm:$0xff] }
 0x365   :  { %v595_v37 = vadd.f32 %v594_v35, %v593_v33  ;;  %v1119_v33 = vld [vmem:[%s2710_s7 + $0x1a8] sm:$0xff]  ;;  %v1110_v29 = vld [vmem:[%s2710_s7 + $0x160] sm:$0xff] }
 0x366   :  { %v596_v38 = vadd.f32 0.8, %v589_v36  ;;  %v1071_v35 = vld [vmem:[%s2710_s7 + $0x28] sm:$0xff]  ;;  %v1860_v36 = vpack.c.bf16 %v1119_v33, %v1118_v31  ;;  %v1878_v31 = vpack.c.bf16 %v1111_v30, %v1110_v29  ;;  %v1097_v33 = vld [vmem:[%s2710_s7 + $0xf8] sm:$0xff] }
 0x367   :  { %v597_v39 = vadd.f32 0.8, %v595_v37  ;;  %v1830_v37 = vpack.c.bf16 %v1071_v35, %v1070_v34  ;;  %v1128_v34 = vld [vmem:[%s2710_s7 + $0x1f0] sm:$0xff] }
 0x368   :  { %1903 = vrsqrt.f32 %v596_v38  ;;  %v1102_v38 = vld [vmem:[%s2710_s7 + $0x120] sm:$0xff] }
 0x369   :  { %1905 = vrsqrt.f32 %v597_v39  ;;  %v1103_v39 = vld [vmem:[%s2710_s7 + $0x128] sm:$0xff] }
 0x372   :  { %v1904_v42 = vpop.eup %1903 }
 0x373   :  { %v1906_v43 = vpop.eup %1905  ;;  %v600_v44 = vmul.f32 %v1904_v42, %v2429_v40  ;;  %v1862_v42 = vpack.c.bf16 %v1103_v39, %v1102_v38  ;;  %v1081_v38 = vld [vmem:[%s2710_s7 + $0x78] sm:$0xff] }
 0x374   :  { %v601_v45 = vmul.f32 %v1906_v43, %v2431_v41  ;;  %v1088_v43 = vld [vmem:[%s2710_s7 + $0xb0] sm:$0xff] }
 0x375   :  { %v602_v46 = vmul.f32 %v600_v44, %v571_v18  ;;  %v615_v49 = vrot.slane %v600_v44, %v2397_v2  ;;  %v1085_v18 = vld [vmem:[%s2710_s7 + $0x98] sm:$0xff] }
 0x376   :  { %v603_v47 = vmul.f32 %v601_v45, %v577_v19  ;;  %v619_v51 = vrot.slane %v601_v45, %v2397_v2  ;;  %v1082_v2 = vld [vmem:[%s2710_s7 + $0x80] sm:$0xff]  ;;  %v1116_v19 = vld [vmem:[%s2710_s7 + $0x190] sm:$0xff]  ;;  %v1824_v20 = vpack.c.bf16 %v1085_v18, %v1084_v17  ;;  %v1089_v44 = vld [vmem:[%s2710_s7 + $0xb8] sm:$0xff] }
 0x377   :  { %v606_v48 = vrot.slane %v602_v46, 7  ;;  %v620_v54 = vmul.f32 %v615_v49, %v560_v63  ;;  %v1083_v63 = vld [vmem:[%s2710_s7 + $0x88] sm:$0xff]  ;;  %v1856_v24 = vpack.c.bf16 %v1117_v21, %v1116_v19  ;;  %v1120_v45 = vld [vmem:[%s2710_s7 + $0x1b0] sm:$0xff]  ;;  %v1832_v46 = vpack.c.bf16 %v1089_v44, %v1088_v43  ;;  %v1073_v49 = vld [vmem:[%s2710_s7 + $0x38] sm:$0xff] }
 0x378   :  { %v607_v50 = vrot.slane %v603_v47, 7  ;;  %v621_v56 = vmul.f32 %v619_v51, %v562_v5  ;;  %v1820_v5 = vpack.c.bf16 %v1083_v63, %v1082_v2  ;;  %v1121_v47 = vld [vmem:[%s2710_s7 + $0x1b8] sm:$0xff]  ;;  %v1107_v2 = vld [vmem:[%s2710_s7 + $0x148] sm:$0xff]  ;;  %v1108_v17 = vld [vmem:[%s2710_s7 + $0x150] sm:$0xff] }
 0x379   :  { %v610_v52 = vsub.f32 %v2429_v40, %v606_v48  ;;  %v1072_v48 = vld [vmem:[%s2710_s7 + $0x30] sm:$0xff]  ;;  %v1109_v18 = vld [vmem:[%s2710_s7 + $0x158] sm:$0xff]  ;;  %v1095_v21 = vld [vmem:[%s2710_s7 + $0xe8] sm:$0xff] }
 0x37a   :  { %v611_v53 = vsub.f32 %v2431_v41, %v607_v50  ;;  %1821 = vmatprep.subr.bf16.mxu0 %v1820_v5  ;;  %v1864_v50 = vpack.c.bf16 %v1121_v47, %v1120_v45  ;;  %v1834_v51 = vpack.c.bf16 %v1073_v49, %v1072_v48  ;;  %v1092_v5 = vld [vmem:[%s2710_s7 + $0xd0] sm:$0xff]  ;;  %v1874_v19 = vpack.c.bf16 %v1109_v18, %v1108_v17  ;;  %v1113_v44 = vld [vmem:[%s2710_s7 + $0x178] sm:$0xff]  ;;  %v2637_v49 = vld [vmem:[#allocation2] sm:$0xff] }
 0x37b   :  { %v625_v55 = vrot.slane %v610_v52, %v2404_v0  ;;  %v1104_v52 = vld [vmem:[%s2710_s7 + $0x130] sm:$0xff]  ;;  %v103_v48 = vld [vmem:[#allocation2 + $0x18] sm:$0xff] }
 0x37c   :  { %v629_v59 = vrot.slane %v611_v53, %v2404_v0  ;;  %v1114_v0 = vld [vmem:[%s2710_s7 + $0x180] sm:$0xff]  ;;  %v1105_v53 = vld [vmem:[%s2710_s7 + $0x138] sm:$0xff]  ;;  %v1112_v43 = vld [vmem:[%s2710_s7 + $0x170] sm:$0xff] }
 0x37d   :  { %v630_v60 = vadd.f32 %v625_v55, %v620_v54  ;;  %v1852_v13 = vpack.c.bf16 %v1115_v10, %v1114_v0  ;;  %v1866_v54 = vpack.c.bf16 %v1105_v53, %v1104_v52  ;;  %v1090_v55 = vld [vmem:[%s2710_s7 + $0xc0] sm:$0xff]  ;;  %v1093_v10 = vld [vmem:[%s2710_s7 + $0xd8] sm:$0xff]  ;;  %v1882_v45 = vpack.c.bf16 %v1113_v44, %v1112_v43  ;;  %v102_v47 = vld [vmem:[#allocation2 + $0x10] sm:$0xff] }
 0x37e   :  { %v631_v62 = vadd.f32 %v629_v59, %v621_v56  ;;  %v1091_v56 = vld [vmem:[%s2710_s7 + $0xc8] sm:$0xff]  ;;  %v1840_v12 = vpack.c.bf16 %v1093_v10, %v1092_v5 }
 0x37f   :  { %v632_v4 = vmul.f32 0.2, %v630_v60  ;;  %1853 = vmatprep.subr.bf16.mxu1 %v1852_v13  ;;  %v1836_v59 = vpack.c.bf16 %v1091_v56, %v1090_v55  ;;  %v1125_v13 = vld [vmem:[%s2710_s7 + $0x1d8] sm:$0xff] }
 0x380   :  { %v633_v7 = vmul.f32 0.2, %v631_v62  ;;  %v1872_v16 = vpack.c.bf16 %v1125_v13, %v1124_v11 }
 0x381   :  { %v634_v9 = vmax.f32 %v630_v60, %v632_v4  ;;  %v1122_v60 = vld [vmem:[%s2710_s7 + $0x1c0] sm:$0xff] }
 0x382   :  { %v635_v8 = vmax.f32 %v631_v62, %v633_v7  ;;  %v1123_v62 = vld [vmem:[%s2710_s7 + $0x1c8] sm:$0xff]  ;;  %v1074_v4 = vld [vmem:[%s2710_s7 + $0x40] sm:$0xff] }
 0x383   :  { %v1868_v7 = vpack.c.bf16 %v1123_v62, %v1122_v60 }
 0x384   :  { %844 = vmatprep.mubr.f32.mxu0 %v635_v8  ;;  %915 = vmatprep.mubr.f32.mxu1 %v635_v8  ;;  %v1075_v8 = vld [vmem:[%s2710_s7 + $0x48] sm:$0xff] }
 0x385   :  { %845 = vmatmul.mubr.f32.vlgmr.msra.gmra.mrb[4].mxu0 %v634_v9  ;;  %916 = vmatmul.mubr.f32.vlgmr.msra.gmra.mrb[4].mxu1 %v634_v9  ;;  %v1106_v9 = vld [vmem:[%s2710_s7 + $0x140] sm:$0xff]  ;;  %v1838_v63 = vpack.c.bf16 %v1075_v8, %v1074_v4 }
 0x386   :  { %1823 = vmatpush3.bf16.msra.mxu0 %v1822_v14  ;;  %1855 = vmatpush3.bf16.msra.mxu1 %v1854_v3  ;;  %v1870_v0 = vpack.c.bf16 %v1107_v2, %v1106_v9  ;;  %v1076_v14 = vld [vmem:[%s2710_s7 + $0x50] sm:$0xff] }
 0x387   :  { %1825 = vmatprep.subr.bf16.mxu0 %v1824_v20  ;;  %1857 = vmatprep.subr.bf16.mxu1 %v1856_v24  ;;  %v1842_v3 = vpack.c.bf16 %v1077_v15, %v1076_v14  ;;  %v1094_v20 = vld [vmem:[%s2710_s7 + $0xe0] sm:$0xff]  ;;  %v1127_v24 = vld [vmem:[%s2710_s7 + $0x1e8] sm:$0xff] }
 0x388   :  { %v1844_v23 = vpack.c.bf16 %v1095_v21, %v1094_v20  ;;  %v1876_v27 = vpack.c.bf16 %v1127_v24, %v1126_v22 }
 0x38a   :  { %1827 = vmatpush3.bf16.msra.mxu0 %v1826_v25  ;;  %1859 = vmatpush3.bf16.msra.mxu1 %v1858_v28  ;;  %v1078_v25 = vld [vmem:[%s2710_s7 + $0x60] sm:$0xff] }
 0x38b   :  { %1829 = vmatprep.subr.bf16.mxu0 %v1828_v32  ;;  %1861 = vmatprep.subr.bf16.mxu1 %v1860_v36  ;;  %v1846_v28 = vpack.c.bf16 %v1079_v26, %v1078_v25  ;;  %v1096_v32 = vld [vmem:[%s2710_s7 + $0xf0] sm:$0xff]  ;;  %v1129_v36 = vld [vmem:[%s2710_s7 + $0x1f8] sm:$0xff] }
 0x38c   :  { %v1848_v35 = vpack.c.bf16 %v1097_v33, %v1096_v32  ;;  %v1880_v39 = vpack.c.bf16 %v1129_v36, %v1128_v34 }
 0x38e   :  { %1831 = vmatpush3.bf16.msra.mxu0 %v1830_v37  ;;  %1863 = vmatpush3.bf16.msra.mxu1 %v1862_v42  ;;  %v1080_v37 = vld [vmem:[%s2710_s7 + $0x70] sm:$0xff]  ;;  %s2073_s7 = smov [#allocation11]  }
 0x38f   :  { %1833 = vmatprep.subr.bf16.mxu0 %v1832_v46  ;;  %1865 = vmatprep.subr.bf16.mxu1 %v1864_v50  ;;  %v1850_v42 = vpack.c.bf16 %v1081_v38, %v1080_v37  ;;  %v2635_v46 = vsub.s32 3, %v2394_v1  ;;  %s1361_s20 = sshll.u32 %s2073_s7, 4  ;;  %s1362_s20 = int_to_ptr.vmem [resolvable:$true] %s1361_s20 }
 0x390   :  { %s2028_s21 = scalar_lea.vmem %s1362_s20, 128  ;;  %p2033_p13 = scmp.lt.s32.totalorder %s1362_s20, %s1362_s20 }
 0x391   :  { %v767_v50 = vrot.slane %v2637_v49, %v2635_v46  ;;  %v771_v52 = vrot.slane %v2419_v58, %v2635_v46  ;;  %v779_v53 = vrot.slane %v103_v48, %v2635_v46  ;;  %p2029_p12 = scmp.ne.s32.totalorder %s1362_s20, %s2028_s21  ;;  %p2034_p0 = scmp.lt.s32.totalorder %s2028_s21, %s2028_s21 }
 0x392   :  { %1835 = vmatpush3.bf16.msra.mxu0 %v1834_v51  ;;  %1867 = vmatpush3.bf16.msra.mxu1 %v1866_v54  ;;  %v775_v51 = vrot.slane %v102_v47, %v2635_v46 }
 0x393   :  { %1837 = vmatprep.subr.bf16.mxu0 %v1836_v59  ;;  %1869 = vmatprep.subr.bf16.mxu1 %v1868_v7  ;;  %p2035_p1 = por %p2034_p0, %p2033_p13 }
 0x395   :  { %p2036_p2 = pnand %p2035_p1, %p2029_p12 }
 0x396   :  { %1839 = vmatpush3.bf16.msra.mxu0 %v1838_v63  ;;  %1871 = vmatpush3.bf16.msra.mxu1 %v1870_v0 }
 0x397   :  { %1841 = vmatprep.subr.bf16.mxu0 %v1840_v12  ;;  %1873 = vmatprep.subr.bf16.mxu1 %v1872_v16 }
 0x39a   :  { %1843 = vmatpush3.bf16.msra.mxu0 %v1842_v3  ;;  %1875 = vmatpush3.bf16.msra.mxu1 %v1874_v19 }
 0x39b   :  { %1845 = vmatprep.subr.bf16.mxu0 %v1844_v23  ;;  %1877 = vmatprep.subr.bf16.mxu1 %v1876_v27 }
 0x39e   :  { %1847 = vmatpush3.bf16.msra.mxu0 %v1846_v28  ;;  %1879 = vmatpush3.bf16.msra.mxu1 %v1878_v31 }
 0x39f   :  { %1849 = vmatprep.subr.bf16.mxu0 %v1848_v35  ;;  %1881 = vmatprep.subr.bf16.mxu1 %v1880_v39 }
 0x3a2   :  { %1851 = vmatpush3.bf16.msra.mxu0 %v1850_v42  ;;  %1883 = vmatpush3.bf16.msra.mxu1 %v1882_v45 }
 0x3a3   :  { %1567 = vmatprep.subr.mxu0 %v2071_v61 }
 0x458   :  { %v846_v54 = vpop.f32.mrb[4].mxu0  ;;  %v917_v55 = vpop.f32.mrb[4].mxu1 }
 0x459   :  { %v2645_v56 = vadd.f32 %v846_v54, %v767_v50  ;;  %v2647_v59 = vadd.f32 %v917_v55, %v775_v51  ;;  %v848_v60 = vpop.f32.mrb[5].mxu0  ;;  %v919_v62 = vpop.f32.mrb[5].mxu1 }
 0x45a   :  { %v2649_v4 = vadd.f32 %v848_v60, %v771_v52  ;;  %v2651_v7 = vadd.f32 %v919_v62, %v779_v53 }
 0x45b   :  { %v922_v8 = vmul.f32 %v2645_v56, %v2408_v6  ;;  %v924_v58 = vmul.f32 %v2647_v59, %v2408_v6 }
 0x45c   :  { %v923_v9 = vmul.f32 %v2649_v4, %v2408_v6  ;;  %v925_v2 = vmul.f32 %v2651_v7, %v2408_v6 }
 0x45d   :  { %v926_v63 = vrot.slane %v922_v8, 4  ;;  %v938_v0 = vrot.slane %v924_v58, 4 }
 0x45e   :  { %v932_v5 = vrot.slane %v923_v9, 4  ;;  %v944_v10 = vrot.slane %v925_v2, 4 }
 0x45f   :  { %v927_v11 = vadd.f32 %v926_v63, %v922_v8  ;;  %v939_v12 = vadd.f32 %v938_v0, %v924_v58 }
 0x460   :  { %v933_v13 = vadd.f32 %v932_v5, %v923_v9  ;;  %v945_v14 = vadd.f32 %v944_v10, %v925_v2 }
 0x461   :  { %v928_v15 = vrot.slane %v927_v11, 2  ;;  %v940_v16 = vrot.slane %v939_v12, 2 }
 0x462   :  { %v934_v3 = vrot.slane %v933_v13, 2  ;;  %v946_v17 = vrot.slane %v945_v14, 2 }
 0x463   :  { %v929_v18 = vadd.f32 %v928_v15, %v927_v11  ;;  %v941_v19 = vadd.f32 %v940_v16, %v939_v12 }
 0x464   :  { %v935_v20 = vadd.f32 %v934_v3, %v933_v13  ;;  %v947_v21 = vadd.f32 %v946_v17, %v945_v14  ;;  %v106_v17 = vld [vmem:[#allocation2 + $0x30] sm:$0xff] }
 0x465   :  { %v930_v22 = vrot.slane %v929_v18, 1  ;;  %v942_v23 = vrot.slane %v941_v19, 1 }
 0x466   :  { %v936_v24 = vrot.slane %v935_v20, 1  ;;  %v948_v25 = vrot.slane %v947_v21, 1 }
 0x467   :  { %v931_v26 = vadd.f32 %v930_v22, %v929_v18  ;;  %v943_v27 = vadd.f32 %v942_v23, %v941_v19 }
 0x468   :  { %v937_v28 = vadd.f32 %v936_v24, %v935_v20  ;;  %v949_v29 = vadd.f32 %v948_v25, %v947_v21  ;;  %v107_v21 = vld [vmem:[#allocation2 + $0x38] sm:$0xff] }
 0x469   :  { %v950_v30 = vsub.f32 %v2645_v56, %v931_v26  ;;  %v952_v31 = vsub.f32 %v2647_v59, %v943_v27 }
 0x46a   :  { %v951_v32 = vsub.f32 %v2649_v4, %v937_v28  ;;  %v953_v33 = vsub.f32 %v2651_v7, %v949_v29 }
 0x46b   :  { %v954_v34 = vmul.f32 %v950_v30, %v950_v30  ;;  %v956_v35 = vmul.f32 %v952_v31, %v952_v31 }
 0x46c   :  { %v955_v36 = vmul.f32 %v951_v32, %v951_v32  ;;  %v957_v37 = vmul.f32 %v953_v33, %v953_v33 }
 0x46d   :  { %v958_v38 = vmul.f32 %v954_v34, %v2408_v6  ;;  %v960_v39 = vmul.f32 %v956_v35, %v2408_v6 }
 0x46e   :  { %v959_v42 = vmul.f32 %v955_v36, %v2408_v6  ;;  %v961_v43 = vmul.f32 %v957_v37, %v2408_v6 }
 0x46f   :  { %v962_v44 = vrot.slane %v958_v38, 4  ;;  %v974_v45 = vrot.slane %v960_v39, 4 }
 0x470   :  { %v968_v47 = vrot.slane %v959_v42, 4  ;;  %v980_v48 = vrot.slane %v961_v43, 4 }
 0x471   :  { %v963_v50 = vadd.f32 %v962_v44, %v958_v38  ;;  %v975_v51 = vadd.f32 %v974_v45, %v960_v39 }
 0x472   :  { %v969_v52 = vadd.f32 %v968_v47, %v959_v42  ;;  %v981_v53 = vadd.f32 %v980_v48, %v961_v43 }
 0x473   :  { %v964_v54 = vrot.slane %v963_v50, 2  ;;  %v976_v55 = vrot.slane %v975_v51, 2 }
 0x474   :  { %v970_v60 = vrot.slane %v969_v52, 2  ;;  %v982_v62 = vrot.slane %v981_v53, 2 }
 0x475   :  { %v965_v8 = vadd.f32 %v964_v54, %v963_v50  ;;  %v977_v58 = vadd.f32 %v976_v55, %v975_v51 }
 0x476   :  { %v971_v9 = vadd.f32 %v970_v60, %v969_v52  ;;  %v983_v2 = vadd.f32 %v982_v62, %v981_v53 }
 0x477   :  { %v966_v63 = vrot.slane %v965_v8, 1  ;;  %v978_v0 = vrot.slane %v977_v58, 1 }
 0x478   :  { %v972_v5 = vrot.slane %v971_v9, 1  ;;  %v984_v6 = vrot.slane %v983_v2, 1 }
 0x479   :  { %v967_v10 = vadd.f32 %v966_v63, %v965_v8  ;;  %v979_v11 = vadd.f32 %v978_v0, %v977_v58 }
 0x47a   :  { %v973_v12 = vadd.f32 %v972_v5, %v971_v9  ;;  %v985_v13 = vadd.f32 %v984_v6, %v983_v2 }
 0x47b   :  { %v986_v14 = vadd.f32 0.8, %v967_v10  ;;  %v988_v15 = vadd.f32 0.8, %v979_v11 }
 0x47c   :  { %v987_v16 = vadd.f32 0.8, %v973_v12  ;;  %v989_v3 = vadd.f32 0.8, %v985_v13 }
 0x47d   :  { %1907 = vrsqrt.f32 %v986_v14 }
 0x47e   :  { %1909 = vrsqrt.f32 %v988_v15 }
 0x47f   :  { %1911 = vrsqrt.f32 %v987_v16 }
 0x480   :  { %1913 = vrsqrt.f32 %v989_v3 }
 0x487   :  { %v1908_v18 = vpop.eup %1907 }
 0x488   :  { %v1910_v19 = vpop.eup %1909  ;;  %v994_v20 = vmul.f32 %v1908_v18, %v2429_v40 }
 0x489   :  { %v1912_v22 = vpop.eup %1911  ;;  %v996_v23 = vmul.f32 %v1910_v19, %v106_v17 }
 0x48a   :  { %v1914_v24 = vpop.eup %1913  ;;  %v998_v25 = vmul.f32 %v994_v20, %v931_v26  ;;  %v995_v30 = vmul.f32 %v1912_v22, %v2431_v41  ;;  %v1021_v34 = vrot.slane %v994_v20, %v2417_v57 }
 0x48b   :  { %v1000_v31 = vmul.f32 %v996_v23, %v943_v27  ;;  %v997_v32 = vmul.f32 %v1914_v24, %v107_v21  ;;  %v1029_v37 = vrot.slane %v996_v23, %v2417_v57 }
 0x48c   :  { %v1006_v33 = vrot.slane %v998_v25, 7  ;;  %v999_v35 = vmul.f32 %v995_v30, %v937_v28  ;;  %v1025_v43 = vrot.slane %v995_v30, %v2417_v57  ;;  %v1034_v27 = vmul.f32 %v1021_v34, %v2645_v56 }
 0x48d   :  { %v1008_v36 = vrot.slane %v1000_v31, 7  ;;  %v1001_v38 = vmul.f32 %v997_v32, %v949_v29  ;;  %v1033_v26 = vrot.slane %v997_v32, %v2417_v57  ;;  %v1036_v28 = vmul.f32 %v1029_v37, %v2647_v59 }
 0x48e   :  { %v1014_v39 = vsub.f32 %v2429_v40, %v1006_v33  ;;  %v1007_v42 = vrot.slane %v999_v35, 7  ;;  %v1035_v40 = vmul.f32 %v1025_v43, %v2649_v4  ;;  %v1275_v4 = vld [vmem:[#allocation10] sm:$0xff] }
 0x48f   :  { %v1016_v44 = vsub.f32 %v106_v17, %v1008_v36  ;;  %v1009_v45 = vrot.slane %v1001_v38, 7  ;;  %v1037_v54 = vmul.f32 %v1033_v26, %v2651_v7 }
 0x490   :  { %v1041_v47 = vrot.slane %v1014_v39, %v2635_v46  ;;  %v1015_v48 = vsub.f32 %v2431_v41, %v1007_v42 }
 0x491   :  { %v1049_v50 = vrot.slane %v1016_v44, %v2635_v46  ;;  %v1017_v29 = vsub.f32 %v107_v21, %v1009_v45 }
 0x492   :  { %v1054_v51 = vadd.f32 %v1041_v47, %v1034_v27  ;;  %v1045_v52 = vrot.slane %v1015_v48, %v2635_v46 }
 0x493   :  { %v1056_v53 = vadd.f32 %v1049_v50, %v1036_v28  ;;  %v1053_v57 = vrot.slane %v1017_v29, %v2635_v46  ;;  %v1132_v46 = vsub.s32 4, %v2394_v1 }
 0x494   :  { %v1055_v56 = vadd.f32 %v1045_v52, %v1035_v40  ;;  %v1058_v55 = vmul.f32 0.2, %v1054_v51 }
 0x495   :  { %v1057_v60 = vadd.f32 %v1053_v57, %v1037_v54  ;;  %v1060_v62 = vmul.f32 0.2, %v1056_v53  ;;  %v1133_v63 = vrot.slane %v2637_v49, %v1132_v46 }
 0x496   :  { %v1059_v41 = vmul.f32 0.2, %v1055_v56  ;;  %v1062_v9 = vmax.f32 %v1054_v51, %v1058_v55 }
 0x497   :  { %v1061_v8 = vmul.f32 0.2, %v1057_v60  ;;  %v1064_v2 = vmax.f32 %v1056_v53, %v1060_v62 }
 0x498   :  { %v1063_v59 = vmax.f32 %v1055_v56, %v1059_v41 }
 0x499   :  { %v1065_v58 = vmax.f32 %v1057_v60, %v1061_v8 }
 0x49a   :  { %1198 = vmatprep.mubr.f32.mxu0 %v1063_v59 }
 0x49b   :  { %1268 = vmatprep.mubr.f32.mxu1 %v1065_v58  ;;  %1199 = vmatmul.mubr.f32.vlgmr.msra.gmra.mrb[6].mxu0 %v1062_v9 }
 0x49c   :  { %1269 = vmatmul.mubr.f32.vlgmr.msra.gmra.mrb[6].mxu1 %v1064_v2  ;;  %1569 = vmatprep.mubr.msk.f32.mxu0 %vm2070_vm0, %v2071_v61  ;;  %v1278_v61 = vsub.s32 5, %v2394_v1 }
 0x49d   :  { %1568 = vmatpush3.msra.mxu0 %v1275_v4 }
 0x49e   :  { %v1279_v15 = vrot.slane %v2637_v49, %v1278_v61 }
 0x56e   :  { %v1492_v7 = vpop.f32.mrb[6].mxu0 }
 0x56f   :  { %v1527_v0 = vpop.f32.mrb[6].mxu1  ;;  %v1493_v5 = vpop.f32.mrb[7].mxu0 }
 0x570   :  { %v1494_v6 = vadd.f32 %v1493_v5, %v1492_v7  ;;  %v1528_v10 = vpop.f32.mrb[7].mxu1 }
 0x571   :  { %v1529_v11 = vadd.f32 %v1528_v10, %v1527_v0 }
 0x572   :  { %v1201_v12 = vadd.f32 %v1494_v6, %v1133_v63 }
 0x574   :  { %v1271_v13 = vadd.f32 %v1529_v11, %v1201_v12 }
 0x576   :  { %1915 = vtanh.f32 %v1271_v13 }
 0x580   :  { %v1916_v14 = vpop.eup %1915 }
 0x581   :  { %1570 = vmatmul.mubr.msk.f32.vlgmr.msra.gmra.mrb[8].mxu0 %vm1280_vm1, %v1916_v14 }
 0x654   :  { %v1350_v16 = vpop.f32.mrb[8].mxu0 }
 0x655   :  { %v1351_v3 = vadd.f32 %v1350_v16, %v1279_v15  ;;  %v1571_v17 = vpop.f32.mrb[9].mxu0 }
 0x657   :  { %1354 = vst.msk [vmem:[#allocation11] sm:$0xff] %vm1280_vm1, %v1351_v3 }
 0x658   :  { %2039 = shalt.err (!%p2036_p2)
}
 0x659   :  { %s2040_s25 = scalar_lea.hbm %s2712_s9, 128 }
 0x65a   :  { %p2041_p3 = scmp.ne.s32.totalorder %s2712_s9, %s2040_s25  ;;  %p2044_p4 = scmp.lt.u32.totalorder %s2040_s25, %s2712_s9 }
 0x65c   :  { %p2046_p5 = pnand %p2044_p4, %p2041_p3 }
 0x65e   :  { %2049 = shalt.err (!%p2046_p5)
}
 0x65f   :  { %1364 = dma.vmem_to_hbm [thread:$0]  %s1362_s20, 128, %s2712_s9, [#allocation4]  }
 0x660   :  { %2056 = dma.done.wait [#allocation4], 128  }
 0x661   :  { %2057 = vsyncadd [#allocation4], 4294967168 }
 0x662   :  { %1368 = vsyncpa [#allocation3], 1 }
 0x663   :  { %1369 = vsyncpa [#allocation6], 1 }
 0x664   :  { %1370 = vsyncpa [#allocation9], 1 }
 0x665   :  { %1371 = vsyncpa [#allocation4], 1 }

</bundles_post_ra>
